<compile_context>
chip_gen: v5e
topology: v5e:2x2
jax: 0.10.0
libtpu: 0.0.40
codegen_flags: <defaults>
</compile_context>

<pallas_src>
import functools

import jax
import jax.numpy as jnp
from jax.experimental import pallas as pl
from jax.experimental.pallas import tpu as pltpu

LN_EPS = 1e-5  # torch.nn.LayerNorm default

# order of dim-sized 1-D params packed into the (depth, 8, dim) slab
VEC_NAMES = ("ln1_g", "ln1_b", "bo", "ln2_g", "ln2_b", "b2", "ln3_g", "ln3_b")


# ------------------------------ kernel helpers -------------------------------

def _layernorm(x, g, b):
    mean = jnp.mean(x, axis=-1, keepdims=True)
    xc = x - mean
    var = jnp.mean(xc * xc, axis=-1, keepdims=True)      # biased var, like torch
    return xc * jax.lax.rsqrt(var + LN_EPS) * g + b


def _encoder_kernel(x_ref, vecs_ref, b1_ref, wq_ref, wk_ref, wv_ref,
                    wo_ref, w1_ref, w2_ref, out_ref, x_sc,
                    *, depth, heads, dim_head, n_tok, batch):
    """One Transformer block per grid step; residual stream resident in VMEM."""
    l = pl.program_id(0)
    scale = dim_head ** -0.5
    f32, bf16 = jnp.float32, jnp.bfloat16

    # --- init residual stream at the first layer -----------------------------
    @pl.when(l == 0)
    def _():
        x_sc[...] = x_ref[...]

    # --- this layer's parameters ---------------------------------------------
    vecs = vecs_ref[0]                                   # (8, dim) f32
    ln1_g, ln1_b = vecs[0:1], vecs[1:2]
    bo = vecs[2:3]
    ln2_g, ln2_b = vecs[3:4], vecs[4:5]
    b2 = vecs[5:6]
    ln3_g, ln3_b = vecs[6:7], vecs[7:8]
    b1 = b1_ref[0]                                       # (1, mlp_dim) f32
    wq, wk, wv = wq_ref[0], wk_ref[0], wv_ref[0]          # (dim, inner) bf16
    wo = wo_ref[0]                                        # (inner, dim) bf16
    w1, w2 = w1_ref[0], w2_ref[0]                         # bf16

    x = x_sc[...]                                         # (batch*n_tok, dim) f32

    # ---- PreNorm + self-attention + residual ---------------------------------
    xn = _layernorm(x, ln1_g, ln1_b).astype(bf16)
    q = jnp.dot(xn, wq, preferred_element_type=f32) * scale   # scale folded once
    k = jnp.dot(xn, wk, preferred_element_type=f32)
    v = jnp.dot(xn, wv, preferred_element_type=f32)

    rows = []
    for i in range(batch):                                # batch folded in-step
        r0 = i * n_tok
        q_r = q[r0:r0 + n_tok]                            # (N, inner) f32
        kT_r = jnp.transpose(k[r0:r0 + n_tok]).astype(bf16)   # (inner, N), 1 xpose/row
        v_r = v[r0:r0 + n_tok].astype(bf16)               # (N, inner)
        head_outs = []
        for h in range(heads):
            lo = h * dim_head
            hi = lo + dim_head
            dots = jnp.dot(q_r[:, lo:hi].astype(bf16), kT_r[lo:hi, :],
                           preferred_element_type=f32)    # (N, N)
            dots = dots - jnp.max(dots, axis=-1, keepdims=True)
            e = jnp.exp(dots)
            p = e * pl.reciprocal(jnp.sum(e, axis=-1, keepdims=True), approx=True)
            head_outs.append(jnp.dot(p.astype(bf16), v_r[:, lo:hi],
                                     preferred_element_type=f32))  # (N, dh)
        rows.append(jnp.concatenate(head_outs, axis=-1))  # (N, inner)
    merged = jnp.concatenate(rows, axis=0).astype(bf16)   # (bN, inner)
    # fused output projection: ONE matmul against the full wo
    x = x + jnp.dot(merged, wo, preferred_element_type=f32) + bo
    # TODO(synk): nn.Dropout omitted (dropout=0.0 / inference -> identity)

    # ---- PreNorm + FFN (exact erf GELU) + residual ----------------------------
    xn2 = _layernorm(x, ln2_g, ln2_b).astype(bf16)
    hdn = jnp.dot(xn2, w1, preferred_element_type=f32) + b1
    hdn = 0.5 * hdn * (1.0 + jax.lax.erf(hdn * 0.7071067811865476))
    x = x + jnp.dot(hdn.astype(bf16), w2, preferred_element_type=f32) + b2

    # ---- per-Transformer final LayerNorm --------------------------------------
    x = _layernorm(x, ln3_g, ln3_b)
    x_sc[...] = x

    # --- emit CLS rows at the last layer ---------------------------------------
    @pl.when(l == depth - 1)
    def _():
        for i in range(batch):
            out_ref[i:i + 1, :] = x[i * n_tok:i * n_tok + 1, :]


# ------------------------------ module forward -------------------------------

def multimodality_encoder_classic(params, mri_tokens, pet_tokens, *,
                                  heads, dim_head):
    """MultiModalityEncoder_Classic.forward -> (b, dim) CLS embedding."""
    b, n_mri, dim = mri_tokens.shape
    n_pet = pet_tokens.shape[1]
    n_tok = 1 + n_mri + n_pet
    layers = params["layers"]
    depth = len(layers)
    inner = heads * dim_head
    mlp_dim = layers[0]["w1"].shape[1]

    # token_embedding = cat(cls, mri, pet) along seq; flatten batch into rows
    cls = jnp.broadcast_to(params["cls_token"], (b, 1, dim)).astype(jnp.float32)
    x = jnp.concatenate([cls, mri_tokens.astype(jnp.float32),
                         pet_tokens.astype(jnp.float32)], axis=1)    # (b, N, dim)
    x_flat = x.reshape(b * n_tok, dim)

    # --- stack per-layer params into (depth, ...) slabs ------------------------
    def stack(name):
        return jnp.stack([layer[name] for layer in layers], axis=0)

    vecs = jnp.stack([jnp.stack([layer[n] for n in VEC_NAMES], axis=0)
                      for layer in layers], axis=0)                   # (depth,8,dim) f32
    b1 = stack("b1").reshape(depth, 1, mlp_dim)                       # f32
    wq = stack("wq").astype(jnp.bfloat16)                             # (depth,dim,inner)
    wkv = stack("wkv")
    wk = wkv[:, :, :inner].astype(jnp.bfloat16)                       # split k / v
    wv = wkv[:, :, inner:].astype(jnp.bfloat16)
    wo = stack("wo").astype(jnp.bfloat16)                             # (depth,inner,dim)
    w1 = stack("w1").astype(jnp.bfloat16)                             # (depth,dim,mlp)
    w2 = stack("w2").astype(jnp.bfloat16)                             # (depth,mlp,dim)

    def layer_spec(arr):
        return pl.BlockSpec((1,) + arr.shape[1:], lambda l: (l, 0, 0))

    kernel = functools.partial(_encoder_kernel, depth=depth, heads=heads,
                               dim_head=dim_head, n_tok=n_tok, batch=b)

    out = pl.pallas_call(
        kernel,
        out_shape=jax.ShapeDtypeStruct((b, dim), jnp.float32),
        grid=(depth,),
        in_specs=[pl.BlockSpec((b * n_tok, dim), lambda l: (0, 0)),   # x (fetched once)
                  layer_spec(vecs), layer_spec(b1),
                  layer_spec(wq), layer_spec(wk), layer_spec(wv),
                  layer_spec(wo), layer_spec(w1), layer_spec(w2)],
        out_specs=pl.BlockSpec((b, dim), lambda l: (0, 0)),
        scratch_shapes=[pltpu.VMEM((b * n_tok, dim), jnp.float32)],
        compiler_params=pltpu.CompilerParams(
            dimension_semantics=("arbitrary",)),
    )(x_flat, vecs, b1, wq, wk, wv, wo, w1, w2)
    return out


# ------------------------------ parameter init -------------------------------

def init_transformer_params(key, dim, heads, dim_head, mlp_dim):
    inner = heads * dim_head
    ks = jax.random.split(key, 8)
    s = 0.02
    f32 = jnp.float32
    return {
        "ln1_g": jnp.ones((dim,), f32), "ln1_b": jnp.zeros((dim,), f32),
        "wq": jax.random.normal(ks[0], (dim, inner), f32) * s,          # bias=False
        "wkv": jax.random.normal(ks[1], (dim, 2 * inner), f32) * s,     # bias=False
        "wo": jax.random.normal(ks[2], (inner, dim), f32) * s,
        "bo": jax.random.normal(ks[3], (dim,), f32) * s,
        "ln2_g": jnp.ones((dim,), f32), "ln2_b": jnp.zeros((dim,), f32),
        "w1": jax.random.normal(ks[4], (dim, mlp_dim), f32) * s,
        "b1": jax.random.normal(ks[5], (mlp_dim,), f32) * s,
        "w2": jax.random.normal(ks[6], (mlp_dim, dim), f32) * s,
        "b2": jax.random.normal(ks[7], (dim,), f32) * s,
        "ln3_g": jnp.ones((dim,), f32), "ln3_b": jnp.zeros((dim,), f32),
    }


def init_params(key, dim, depth, heads, dim_head, mlp_dim):
    k_cls, key = jax.random.split(key)
    layers = []
    for _ in range(depth):
        k, key = jax.random.split(key)
        layers.append(init_transformer_params(k, dim, heads, dim_head, mlp_dim))
    return {
        "cls_token": jax.random.normal(k_cls, (1, 1, dim), jnp.float32),
        "layers": layers,
    }


# ----------------------------------- main -------------------------------------

if __name__ == "__main__":
    dim, depth, heads, dim_head, mlp_dim, dropout = 32, 2, 4, 16, 64, 0.0
    batch, n_mri, n_pet = 2, 8, 8

    root = jax.random.PRNGKey(0)
    k_params, k_mri, k_pet = jax.random.split(root, 3)
    params = init_params(k_params, dim, depth, heads, dim_head, mlp_dim)
    mri_tokens = jax.random.normal(k_mri, (batch, n_mri, dim), jnp.float32)
    pet_tokens = jax.random.normal(k_pet, (batch, n_pet, dim), jnp.float32)

    fwd = jax.jit(functools.partial(multimodality_encoder_classic,
                                    heads=heads, dim_head=dim_head))
    cls_embed = fwd(params, mri_tokens, pet_tokens)
    cls_embed = jax.block_until_ready(cls_embed)

    assert cls_embed.shape == (batch, dim), cls_embed.shape
    assert jnp.all(jnp.isfinite(cls_embed))
    print("KERNEL_OK")
</pallas_src>

<mosaic_0001>
module attributes {stable_mosaic.version = 11 : i64} {
  func.func @_encoder_kernel(%arg0: i32, %arg1: memref<34x32xf32, #tpu.memory_space<vmem>>, %arg2: memref<1x8x32xf32, #tpu.memory_space<vmem>>, %arg3: memref<1x1x64xf32, #tpu.memory_space<vmem>>, %arg4: memref<1x32x64xbf16, #tpu.memory_space<vmem>>, %arg5: memref<1x32x64xbf16, #tpu.memory_space<vmem>>, %arg6: memref<1x32x64xbf16, #tpu.memory_space<vmem>>, %arg7: memref<1x64x32xbf16, #tpu.memory_space<vmem>>, %arg8: memref<1x32x64xbf16, #tpu.memory_space<vmem>>, %arg9: memref<1x64x32xbf16, #tpu.memory_space<vmem>>, %arg10: memref<2x32xf32, #tpu.memory_space<vmem>>, %arg11: memref<34x32xf32, #tpu.memory_space<vmem>>) attributes {dimension_semantics = [#tpu.dimension_semantics<arbitrary>], iteration_bounds = array<i64: 2>, scalar_prefetch = 0 : i64, scratch_operands = 1 : i64, tpu.core_type = #tpu.core_type<tc>, window_params = [{pipeline_mode = #tpu.pipeline_mode<synchronous>, transform_indices = @transform_0, window_bounds = array<i64: 34, 32>}, {transform_indices = @transform_1, window_bounds = array<i64: 1, 8, 32>}, {transform_indices = @transform_2, window_bounds = array<i64: 1, 1, 64>}, {transform_indices = @transform_3, window_bounds = array<i64: 1, 32, 64>}, {transform_indices = @transform_4, window_bounds = array<i64: 1, 32, 64>}, {transform_indices = @transform_5, window_bounds = array<i64: 1, 32, 64>}, {transform_indices = @transform_6, window_bounds = array<i64: 1, 64, 32>}, {transform_indices = @transform_7, window_bounds = array<i64: 1, 32, 64>}, {transform_indices = @transform_8, window_bounds = array<i64: 1, 64, 32>}, {pipeline_mode = #tpu.pipeline_mode<synchronous>, transform_indices = @transform_9, window_bounds = array<i64: 2, 32>}]} {
    %c0_i32 = arith.constant 0 : i32
    %0 = arith.cmpi eq, %arg0, %c0_i32 : i32
    %1 = arith.extui %0 : i1 to i32
    %c0_i32_0 = arith.constant 0 : i32
    %2 = arith.cmpi ne, %1, %c0_i32_0 : i32
    scf.if %2 {
      %c0_85 = arith.constant 0 : index
      %c0_86 = arith.constant 0 : index
      %271 = vector.load %arg1[%c0_85, %c0_86] : memref<34x32xf32, #tpu.memory_space<vmem>>, vector<34x32xf32>
      %c0_87 = arith.constant 0 : index
      %c0_88 = arith.constant 0 : index
      %272 = vector.load %arg11[%c0_87, %c0_88] : memref<34x32xf32, #tpu.memory_space<vmem>>, vector<34x32xf32>
      tpu.vector_store %arg11[%c0_87, %c0_88], %271 {strides = array<i32>} : memref<34x32xf32, #tpu.memory_space<vmem>>, vector<34x32xf32>,
    } else {
    }
    %c0 = arith.constant 0 : index
    %c0_1 = arith.constant 0 : index
    %c0_2 = arith.constant 0 : index
    %3 = vector.load %arg2[%c0, %c0_1, %c0_2] : memref<1x8x32xf32, #tpu.memory_space<vmem>>, vector<1x8x32xf32>
    %4 = vector.shape_cast %3 : vector<1x8x32xf32> to vector<8x32xf32>
    %5 = vector.extract_strided_slice %4 {offsets = [0, 0], sizes = [1, 32], strides = [1, 1]} : vector<8x32xf32> to vector<1x32xf32>
    %6 = vector.extract_strided_slice %4 {offsets = [1, 0], sizes = [1, 32], strides = [1, 1]} : vector<8x32xf32> to vector<1x32xf32>
    %7 = vector.extract_strided_slice %4 {offsets = [2, 0], sizes = [1, 32], strides = [1, 1]} : vector<8x32xf32> to vector<1x32xf32>
    %8 = vector.extract_strided_slice %4 {offsets = [3, 0], sizes = [1, 32], strides = [1, 1]} : vector<8x32xf32> to vector<1x32xf32>
    %9 = vector.extract_strided_slice %4 {offsets = [4, 0], sizes = [1, 32], strides = [1, 1]} : vector<8x32xf32> to vector<1x32xf32>
    %10 = vector.extract_strided_slice %4 {offsets = [5, 0], sizes = [1, 32], strides = [1, 1]} : vector<8x32xf32> to vector<1x32xf32>
    %11 = vector.extract_strided_slice %4 {offsets = [6, 0], sizes = [1, 32], strides = [1, 1]} : vector<8x32xf32> to vector<1x32xf32>
    %12 = vector.extract_strided_slice %4 {offsets = [7, 0], sizes = [1, 32], strides = [1, 1]} : vector<8x32xf32> to vector<1x32xf32>
    %c0_3 = arith.constant 0 : index
    %c0_4 = arith.constant 0 : index
    %c0_5 = arith.constant 0 : index
    %13 = vector.load %arg3[%c0_3, %c0_4, %c0_5] : memref<1x1x64xf32, #tpu.memory_space<vmem>>, vector<1x1x64xf32>
    %14 = vector.shape_cast %13 : vector<1x1x64xf32> to vector<1x64xf32>
    %c0_6 = arith.constant 0 : index
    %c0_7 = arith.constant 0 : index
    %c0_8 = arith.constant 0 : index
    %15 = vector.load %arg4[%c0_6, %c0_7, %c0_8] : memref<1x32x64xbf16, #tpu.memory_space<vmem>>, vector<1x32x64xbf16>
    %16 = vector.shape_cast %15 : vector<1x32x64xbf16> to vector<32x64xbf16>
    %c0_9 = arith.constant 0 : index
    %c0_10 = arith.constant 0 : index
    %c0_11 = arith.constant 0 : index
    %17 = vector.load %arg5[%c0_9, %c0_10, %c0_11] : memref<1x32x64xbf16, #tpu.memory_space<vmem>>, vector<1x32x64xbf16>
    %18 = vector.shape_cast %17 : vector<1x32x64xbf16> to vector<32x64xbf16>
    %c0_12 = arith.constant 0 : index
    %c0_13 = arith.constant 0 : index
    %c0_14 = arith.constant 0 : index
    %19 = vector.load %arg6[%c0_12, %c0_13, %c0_14] : memref<1x32x64xbf16, #tpu.memory_space<vmem>>, vector<1x32x64xbf16>
    %20 = vector.shape_cast %19 : vector<1x32x64xbf16> to vector<32x64xbf16>
    %c0_15 = arith.constant 0 : index
    %c0_16 = arith.constant 0 : index
    %c0_17 = arith.constant 0 : index
    %21 = vector.load %arg7[%c0_15, %c0_16, %c0_17] : memref<1x64x32xbf16, #tpu.memory_space<vmem>>, vector<1x64x32xbf16>
    %22 = vector.shape_cast %21 : vector<1x64x32xbf16> to vector<64x32xbf16>
    %c0_18 = arith.constant 0 : index
    %c0_19 = arith.constant 0 : index
    %c0_20 = arith.constant 0 : index
    %23 = vector.load %arg8[%c0_18, %c0_19, %c0_20] : memref<1x32x64xbf16, #tpu.memory_space<vmem>>, vector<1x32x64xbf16>
    %24 = vector.shape_cast %23 : vector<1x32x64xbf16> to vector<32x64xbf16>
    %c0_21 = arith.constant 0 : index
    %c0_22 = arith.constant 0 : index
    %c0_23 = arith.constant 0 : index
    %25 = vector.load %arg9[%c0_21, %c0_22, %c0_23] : memref<1x64x32xbf16, #tpu.memory_space<vmem>>, vector<1x64x32xbf16>
    %26 = vector.shape_cast %25 : vector<1x64x32xbf16> to vector<64x32xbf16>
    %c0_24 = arith.constant 0 : index
    %c0_25 = arith.constant 0 : index
    %27 = vector.load %arg11[%c0_24, %c0_25] : memref<34x32xf32, #tpu.memory_space<vmem>>, vector<34x32xf32>
    %cst = arith.constant dense<0.000000e+00> : vector<34xf32>
    %28 = vector.multi_reduction <add>, %27, %cst [1] : vector<34x32xf32> to vector<34xf32>
    %29 = vector.shape_cast %28 : vector<34xf32> to vector<34x1xf32>
    %cst_26 = arith.constant 3.200000e+01 : f32
    %30 = vector.broadcast %cst_26 : f32 to vector<34x1xf32>
    %31 = arith.divf %29, %30 : vector<34x1xf32>
    %32 = vector.broadcast %31 : vector<34x1xf32> to vector<34x32xf32>
    %33 = arith.subf %27, %32 : vector<34x32xf32>
    %34 = arith.mulf %33, %33 : vector<34x32xf32>
    %cst_27 = arith.constant dense<0.000000e+00> : vector<34xf32>
    %35 = vector.multi_reduction <add>, %34, %cst_27 [1] : vector<34x32xf32> to vector<34xf32>
    %36 = vector.shape_cast %35 : vector<34xf32> to vector<34x1xf32>
    %cst_28 = arith.constant 3.200000e+01 : f32
    %37 = vector.broadcast %cst_28 : f32 to vector<34x1xf32>
    %38 = arith.divf %36, %37 : vector<34x1xf32>
    %cst_29 = arith.constant 9.99999974E-6 : f32
    %39 = vector.broadcast %cst_29 : f32 to vector<34x1xf32>
    %40 = arith.addf %38, %39 : vector<34x1xf32>
    %41 = math.rsqrt %40 : vector<34x1xf32>
    %42 = vector.broadcast %41 : vector<34x1xf32> to vector<34x32xf32>
    %43 = arith.mulf %33, %42 : vector<34x32xf32>
    %44 = vector.broadcast %5 : vector<1x32xf32> to vector<34x32xf32>
    %45 = arith.mulf %43, %44 : vector<34x32xf32>
    %46 = vector.broadcast %6 : vector<1x32xf32> to vector<34x32xf32>
    %47 = arith.addf %45, %46 : vector<34x32xf32>
    %48 = arith.truncf %47 : vector<34x32xf32> to vector<34x32xbf16>
    %cst_30 = arith.constant dense<0.000000e+00> : vector<34x64xf32>
    %49 = tpu.matmul %48, %16, %cst_30 {dimension_numbers = #tpu.dot_dimension_numbers<[1], [0], [0], [1], [0, 0, 1, 1], [], []>} : vector<34x32xbf16>, vector<32x64xbf16>, vector<34x64xf32> -> vector<34x64xf32>
    %cst_31 = arith.constant 2.500000e-01 : f32
    %50 = vector.broadcast %cst_31 : f32 to vector<34x64xf32>
    %51 = arith.mulf %49, %50 : vector<34x64xf32>
    %cst_32 = arith.constant dense<0.000000e+00> : vector<34x64xf32>
    %52 = tpu.matmul %48, %18, %cst_32 {dimension_numbers = #tpu.dot_dimension_numbers<[1], [0], [0], [1], [0, 0, 1, 1], [], []>} : vector<34x32xbf16>, vector<32x64xbf16>, vector<34x64xf32> -> vector<34x64xf32>
    %cst_33 = arith.constant dense<0.000000e+00> : vector<34x64xf32>
    %53 = tpu.matmul %48, %20, %cst_33 {dimension_numbers = #tpu.dot_dimension_numbers<[1], [0], [0], [1], [0, 0, 1, 1], [], []>} : vector<34x32xbf16>, vector<32x64xbf16>, vector<34x64xf32> -> vector<34x64xf32>
    %54 = vector.extract_strided_slice %51 {offsets = [0, 0], sizes = [17, 64], strides = [1, 1]} : vector<34x64xf32> to vector<17x64xf32>
    %55 = vector.extract_strided_slice %52 {offsets = [0, 0], sizes = [17, 64], strides = [1, 1]} : vector<34x64xf32> to vector<17x64xf32>
    %56 = tpu.transpose %55, [1, 0] : vector<17x64xf32> -> vector<64x17xf32>
    %57 = arith.truncf %56 : vector<64x17xf32> to vector<64x17xbf16>
    %58 = vector.extract_strided_slice %53 {offsets = [0, 0], sizes = [17, 64], strides = [1, 1]} : vector<34x64xf32> to vector<17x64xf32>
    %59 = arith.truncf %58 : vector<17x64xf32> to vector<17x64xbf16>
    %60 = vector.extract_strided_slice %54 {offsets = [0, 0], sizes = [17, 16], strides = [1, 1]} : vector<17x64xf32> to vector<17x16xf32>
    %61 = arith.truncf %60 : vector<17x16xf32> to vector<17x16xbf16>
    %62 = vector.extract_strided_slice %57 {offsets = [0, 0], sizes = [16, 17], strides = [1, 1]} : vector<64x17xbf16> to vector<16x17xbf16>
    %cst_34 = arith.constant dense<0.000000e+00> : vector<17x17xf32>
    %63 = tpu.matmul %61, %62, %cst_34 {dimension_numbers = #tpu.dot_dimension_numbers<[1], [0], [0], [1], [0, 0, 1, 1], [], []>} : vector<17x16xbf16>, vector<16x17xbf16>, vector<17x17xf32> -> vector<17x17xf32>
    %cst_35 = arith.constant dense<0xFF800000> : vector<17xf32>
    %64 = vector.multi_reduction <maximumf>, %63, %cst_35 [1] : vector<17x17xf32> to vector<17xf32>
    %65 = vector.shape_cast %64 : vector<17xf32> to vector<17x1xf32>
    %66 = vector.broadcast %65 : vector<17x1xf32> to vector<17x17xf32>
    %67 = arith.subf %63, %66 : vector<17x17xf32>
    %68 = math.exp %67 : vector<17x17xf32>
    %cst_36 = arith.constant dense<0.000000e+00> : vector<17xf32>
    %69 = vector.multi_reduction <add>, %68, %cst_36 [1] : vector<17x17xf32> to vector<17xf32>
    %70 = vector.shape_cast %69 : vector<17xf32> to vector<17x1xf32>
    %71 = tpu.reciprocal %70 {approx = true} : vector<17x1xf32> -> vector<17x1xf32>
    %72 = vector.broadcast %71 : vector<17x1xf32> to vector<17x17xf32>
    %73 = arith.mulf %68, %72 : vector<17x17xf32>
    %74 = arith.truncf %73 : vector<17x17xf32> to vector<17x17xbf16>
    %75 = vector.extract_strided_slice %59 {offsets = [0, 0], sizes = [17, 16], strides = [1, 1]} : vector<17x64xbf16> to vector<17x16xbf16>
    %cst_37 = arith.constant dense<0.000000e+00> : vector<17x16xf32>
    %76 = tpu.matmul %74, %75, %cst_37 {dimension_numbers = #tpu.dot_dimension_numbers<[1], [0], [0], [1], [0, 0, 1, 1], [], []>} : vector<17x17xbf16>, vector<17x16xbf16>, vector<17x16xf32> -> vector<17x16xf32>
    %77 = vector.extract_strided_slice %54 {offsets = [0, 16], sizes = [17, 16], strides = [1, 1]} : vector<17x64xf32> to vector<17x16xf32>
    %78 = arith.truncf %77 : vector<17x16xf32> to vector<17x16xbf16>
    %79 = vector.extract_strided_slice %57 {offsets = [16, 0], sizes = [16, 17], strides = [1, 1]} : vector<64x17xbf16> to vector<16x17xbf16>
    %cst_38 = arith.constant dense<0.000000e+00> : vector<17x17xf32>
    %80 = tpu.matmul %78, %79, %cst_38 {dimension_numbers = #tpu.dot_dimension_numbers<[1], [0], [0], [1], [0, 0, 1, 1], [], []>} : vector<17x16xbf16>, vector<16x17xbf16>, vector<17x17xf32> -> vector<17x17xf32>
    %cst_39 = arith.constant dense<0xFF800000> : vector<17xf32>
    %81 = vector.multi_reduction <maximumf>, %80, %cst_39 [1] : vector<17x17xf32> to vector<17xf32>
    %82 = vector.shape_cast %81 : vector<17xf32> to vector<17x1xf32>
    %83 = vector.broadcast %82 : vector<17x1xf32> to vector<17x17xf32>
    %84 = arith.subf %80, %83 : vector<17x17xf32>
    %85 = math.exp %84 : vector<17x17xf32>
    %cst_40 = arith.constant dense<0.000000e+00> : vector<17xf32>
    %86 = vector.multi_reduction <add>, %85, %cst_40 [1] : vector<17x17xf32> to vector<17xf32>
    %87 = vector.shape_cast %86 : vector<17xf32> to vector<17x1xf32>
    %88 = tpu.reciprocal %87 {approx = true} : vector<17x1xf32> -> vector<17x1xf32>
    %89 = vector.broadcast %88 : vector<17x1xf32> to vector<17x17xf32>
    %90 = arith.mulf %85, %89 : vector<17x17xf32>
    %91 = arith.truncf %90 : vector<17x17xf32> to vector<17x17xbf16>
    %92 = vector.extract_strided_slice %59 {offsets = [0, 16], sizes = [17, 16], strides = [1, 1]} : vector<17x64xbf16> to vector<17x16xbf16>
    %cst_41 = arith.constant dense<0.000000e+00> : vector<17x16xf32>
    %93 = tpu.matmul %91, %92, %cst_41 {dimension_numbers = #tpu.dot_dimension_numbers<[1], [0], [0], [1], [0, 0, 1, 1], [], []>} : vector<17x17xbf16>, vector<17x16xbf16>, vector<17x16xf32> -> vector<17x16xf32>
    %94 = vector.extract_strided_slice %54 {offsets = [0, 32], sizes = [17, 16], strides = [1, 1]} : vector<17x64xf32> to vector<17x16xf32>
    %95 = arith.truncf %94 : vector<17x16xf32> to vector<17x16xbf16>
    %96 = vector.extract_strided_slice %57 {offsets = [32, 0], sizes = [16, 17], strides = [1, 1]} : vector<64x17xbf16> to vector<16x17xbf16>
    %cst_42 = arith.constant dense<0.000000e+00> : vector<17x17xf32>
    %97 = tpu.matmul %95, %96, %cst_42 {dimension_numbers = #tpu.dot_dimension_numbers<[1], [0], [0], [1], [0, 0, 1, 1], [], []>} : vector<17x16xbf16>, vector<16x17xbf16>, vector<17x17xf32> -> vector<17x17xf32>
    %cst_43 = arith.constant dense<0xFF800000> : vector<17xf32>
    %98 = vector.multi_reduction <maximumf>, %97, %cst_43 [1] : vector<17x17xf32> to vector<17xf32>
    %99 = vector.shape_cast %98 : vector<17xf32> to vector<17x1xf32>
    %100 = vector.broadcast %99 : vector<17x1xf32> to vector<17x17xf32>
    %101 = arith.subf %97, %100 : vector<17x17xf32>
    %102 = math.exp %101 : vector<17x17xf32>
    %cst_44 = arith.constant dense<0.000000e+00> : vector<17xf32>
    %103 = vector.multi_reduction <add>, %102, %cst_44 [1] : vector<17x17xf32> to vector<17xf32>
    %104 = vector.shape_cast %103 : vector<17xf32> to vector<17x1xf32>
    %105 = tpu.reciprocal %104 {approx = true} : vector<17x1xf32> -> vector<17x1xf32>
    %106 = vector.broadcast %105 : vector<17x1xf32> to vector<17x17xf32>
    %107 = arith.mulf %102, %106 : vector<17x17xf32>
    %108 = arith.truncf %107 : vector<17x17xf32> to vector<17x17xbf16>
    %109 = vector.extract_strided_slice %59 {offsets = [0, 32], sizes = [17, 16], strides = [1, 1]} : vector<17x64xbf16> to vector<17x16xbf16>
    %cst_45 = arith.constant dense<0.000000e+00> : vector<17x16xf32>
    %110 = tpu.matmul %108, %109, %cst_45 {dimension_numbers = #tpu.dot_dimension_numbers<[1], [0], [0], [1], [0, 0, 1, 1], [], []>} : vector<17x17xbf16>, vector<17x16xbf16>, vector<17x16xf32> -> vector<17x16xf32>
    %111 = vector.extract_strided_slice %54 {offsets = [0, 48], sizes = [17, 16], strides = [1, 1]} : vector<17x64xf32> to vector<17x16xf32>
    %112 = arith.truncf %111 : vector<17x16xf32> to vector<17x16xbf16>
    %113 = vector.extract_strided_slice %57 {offsets = [48, 0], sizes = [16, 17], strides = [1, 1]} : vector<64x17xbf16> to vector<16x17xbf16>
    %cst_46 = arith.constant dense<0.000000e+00> : vector<17x17xf32>
    %114 = tpu.matmul %112, %113, %cst_46 {dimension_numbers = #tpu.dot_dimension_numbers<[1], [0], [0], [1], [0, 0, 1, 1], [], []>} : vector<17x16xbf16>, vector<16x17xbf16>, vector<17x17xf32> -> vector<17x17xf32>
    %cst_47 = arith.constant dense<0xFF800000> : vector<17xf32>
    %115 = vector.multi_reduction <maximumf>, %114, %cst_47 [1] : vector<17x17xf32> to vector<17xf32>
    %116 = vector.shape_cast %115 : vector<17xf32> to vector<17x1xf32>
    %117 = vector.broadcast %116 : vector<17x1xf32> to vector<17x17xf32>
    %118 = arith.subf %114, %117 : vector<17x17xf32>
    %119 = math.exp %118 : vector<17x17xf32>
    %cst_48 = arith.constant dense<0.000000e+00> : vector<17xf32>
    %120 = vector.multi_reduction <add>, %119, %cst_48 [1] : vector<17x17xf32> to vector<17xf32>
    %121 = vector.shape_cast %120 : vector<17xf32> to vector<17x1xf32>
    %122 = tpu.reciprocal %121 {approx = true} : vector<17x1xf32> -> vector<17x1xf32>
    %123 = vector.broadcast %122 : vector<17x1xf32> to vector<17x17xf32>
    %124 = arith.mulf %119, %123 : vector<17x17xf32>
    %125 = arith.truncf %124 : vector<17x17xf32> to vector<17x17xbf16>
    %126 = vector.extract_strided_slice %59 {offsets = [0, 48], sizes = [17, 16], strides = [1, 1]} : vector<17x64xbf16> to vector<17x16xbf16>
    %cst_49 = arith.constant dense<0.000000e+00> : vector<17x16xf32>
    %127 = tpu.matmul %125, %126, %cst_49 {dimension_numbers = #tpu.dot_dimension_numbers<[1], [0], [0], [1], [0, 0, 1, 1], [], []>} : vector<17x17xbf16>, vector<17x16xbf16>, vector<17x16xf32> -> vector<17x16xf32>
    %128 = tpu.concatenate %76, %93, %110, %127 in 1 : vector<17x16xf32>, vector<17x16xf32>, vector<17x16xf32>, vector<17x16xf32> -> vector<17x64xf32>
    %129 = vector.extract_strided_slice %51 {offsets = [17, 0], sizes = [17, 64], strides = [1, 1]} : vector<34x64xf32> to vector<17x64xf32>
    %130 = vector.extract_strided_slice %52 {offsets = [17, 0], sizes = [17, 64], strides = [1, 1]} : vector<34x64xf32> to vector<17x64xf32>
    %131 = tpu.transpose %130, [1, 0] : vector<17x64xf32> -> vector<64x17xf32>
    %132 = arith.truncf %131 : vector<64x17xf32> to vector<64x17xbf16>
    %133 = vector.extract_strided_slice %53 {offsets = [17, 0], sizes = [17, 64], strides = [1, 1]} : vector<34x64xf32> to vector<17x64xf32>
    %134 = arith.truncf %133 : vector<17x64xf32> to vector<17x64xbf16>
    %135 = vector.extract_strided_slice %129 {offsets = [0, 0], sizes = [17, 16], strides = [1, 1]} : vector<17x64xf32> to vector<17x16xf32>
    %136 = arith.truncf %135 : vector<17x16xf32> to vector<17x16xbf16>
    %137 = vector.extract_strided_slice %132 {offsets = [0, 0], sizes = [16, 17], strides = [1, 1]} : vector<64x17xbf16> to vector<16x17xbf16>
    %cst_50 = arith.constant dense<0.000000e+00> : vector<17x17xf32>
    %138 = tpu.matmul %136, %137, %cst_50 {dimension_numbers = #tpu.dot_dimension_numbers<[1], [0], [0], [1], [0, 0, 1, 1], [], []>} : vector<17x16xbf16>, vector<16x17xbf16>, vector<17x17xf32> -> vector<17x17xf32>
    %cst_51 = arith.constant dense<0xFF800000> : vector<17xf32>
    %139 = vector.multi_reduction <maximumf>, %138, %cst_51 [1] : vector<17x17xf32> to vector<17xf32>
    %140 = vector.shape_cast %139 : vector<17xf32> to vector<17x1xf32>
    %141 = vector.broadcast %140 : vector<17x1xf32> to vector<17x17xf32>
    %142 = arith.subf %138, %141 : vector<17x17xf32>
    %143 = math.exp %142 : vector<17x17xf32>
    %cst_52 = arith.constant dense<0.000000e+00> : vector<17xf32>
    %144 = vector.multi_reduction <add>, %143, %cst_52 [1] : vector<17x17xf32> to vector<17xf32>
    %145 = vector.shape_cast %144 : vector<17xf32> to vector<17x1xf32>
    %146 = tpu.reciprocal %145 {approx = true} : vector<17x1xf32> -> vector<17x1xf32>
    %147 = vector.broadcast %146 : vector<17x1xf32> to vector<17x17xf32>
    %148 = arith.mulf %143, %147 : vector<17x17xf32>
    %149 = arith.truncf %148 : vector<17x17xf32> to vector<17x17xbf16>
    %150 = vector.extract_strided_slice %134 {offsets = [0, 0], sizes = [17, 16], strides = [1, 1]} : vector<17x64xbf16> to vector<17x16xbf16>
    %cst_53 = arith.constant dense<0.000000e+00> : vector<17x16xf32>
    %151 = tpu.matmul %149, %150, %cst_53 {dimension_numbers = #tpu.dot_dimension_numbers<[1], [0], [0], [1], [0, 0, 1, 1], [], []>} : vector<17x17xbf16>, vector<17x16xbf16>, vector<17x16xf32> -> vector<17x16xf32>
    %152 = vector.extract_strided_slice %129 {offsets = [0, 16], sizes = [17, 16], strides = [1, 1]} : vector<17x64xf32> to vector<17x16xf32>
    %153 = arith.truncf %152 : vector<17x16xf32> to vector<17x16xbf16>
    %154 = vector.extract_strided_slice %132 {offsets = [16, 0], sizes = [16, 17], strides = [1, 1]} : vector<64x17xbf16> to vector<16x17xbf16>
    %cst_54 = arith.constant dense<0.000000e+00> : vector<17x17xf32>
    %155 = tpu.matmul %153, %154, %cst_54 {dimension_numbers = #tpu.dot_dimension_numbers<[1], [0], [0], [1], [0, 0, 1, 1], [], []>} : vector<17x16xbf16>, vector<16x17xbf16>, vector<17x17xf32> -> vector<17x17xf32>
    %cst_55 = arith.constant dense<0xFF800000> : vector<17xf32>
    %156 = vector.multi_reduction <maximumf>, %155, %cst_55 [1] : vector<17x17xf32> to vector<17xf32>
    %157 = vector.shape_cast %156 : vector<17xf32> to vector<17x1xf32>
    %158 = vector.broadcast %157 : vector<17x1xf32> to vector<17x17xf32>
    %159 = arith.subf %155, %158 : vector<17x17xf32>
    %160 = math.exp %159 : vector<17x17xf32>
    %cst_56 = arith.constant dense<0.000000e+00> : vector<17xf32>
    %161 = vector.multi_reduction <add>, %160, %cst_56 [1] : vector<17x17xf32> to vector<17xf32>
    %162 = vector.shape_cast %161 : vector<17xf32> to vector<17x1xf32>
    %163 = tpu.reciprocal %162 {approx = true} : vector<17x1xf32> -> vector<17x1xf32>
    %164 = vector.broadcast %163 : vector<17x1xf32> to vector<17x17xf32>
    %165 = arith.mulf %160, %164 : vector<17x17xf32>
    %166 = arith.truncf %165 : vector<17x17xf32> to vector<17x17xbf16>
    %167 = vector.extract_strided_slice %134 {offsets = [0, 16], sizes = [17, 16], strides = [1, 1]} : vector<17x64xbf16> to vector<17x16xbf16>
    %cst_57 = arith.constant dense<0.000000e+00> : vector<17x16xf32>
    %168 = tpu.matmul %166, %167, %cst_57 {dimension_numbers = #tpu.dot_dimension_numbers<[1], [0], [0], [1], [0, 0, 1, 1], [], []>} : vector<17x17xbf16>, vector<17x16xbf16>, vector<17x16xf32> -> vector<17x16xf32>
    %169 = vector.extract_strided_slice %129 {offsets = [0, 32], sizes = [17, 16], strides = [1, 1]} : vector<17x64xf32> to vector<17x16xf32>
    %170 = arith.truncf %169 : vector<17x16xf32> to vector<17x16xbf16>
    %171 = vector.extract_strided_slice %132 {offsets = [32, 0], sizes = [16, 17], strides = [1, 1]} : vector<64x17xbf16> to vector<16x17xbf16>
    %cst_58 = arith.constant dense<0.000000e+00> : vector<17x17xf32>
    %172 = tpu.matmul %170, %171, %cst_58 {dimension_numbers = #tpu.dot_dimension_numbers<[1], [0], [0], [1], [0, 0, 1, 1], [], []>} : vector<17x16xbf16>, vector<16x17xbf16>, vector<17x17xf32> -> vector<17x17xf32>
    %cst_59 = arith.constant dense<0xFF800000> : vector<17xf32>
    %173 = vector.multi_reduction <maximumf>, %172, %cst_59 [1] : vector<17x17xf32> to vector<17xf32>
    %174 = vector.shape_cast %173 : vector<17xf32> to vector<17x1xf32>
    %175 = vector.broadcast %174 : vector<17x1xf32> to vector<17x17xf32>
    %176 = arith.subf %172, %175 : vector<17x17xf32>
    %177 = math.exp %176 : vector<17x17xf32>
    %cst_60 = arith.constant dense<0.000000e+00> : vector<17xf32>
    %178 = vector.multi_reduction <add>, %177, %cst_60 [1] : vector<17x17xf32> to vector<17xf32>
    %179 = vector.shape_cast %178 : vector<17xf32> to vector<17x1xf32>
    %180 = tpu.reciprocal %179 {approx = true} : vector<17x1xf32> -> vector<17x1xf32>
    %181 = vector.broadcast %180 : vector<17x1xf32> to vector<17x17xf32>
    %182 = arith.mulf %177, %181 : vector<17x17xf32>
    %183 = arith.truncf %182 : vector<17x17xf32> to vector<17x17xbf16>
    %184 = vector.extract_strided_slice %134 {offsets = [0, 32], sizes = [17, 16], strides = [1, 1]} : vector<17x64xbf16> to vector<17x16xbf16>
    %cst_61 = arith.constant dense<0.000000e+00> : vector<17x16xf32>
    %185 = tpu.matmul %183, %184, %cst_61 {dimension_numbers = #tpu.dot_dimension_numbers<[1], [0], [0], [1], [0, 0, 1, 1], [], []>} : vector<17x17xbf16>, vector<17x16xbf16>, vector<17x16xf32> -> vector<17x16xf32>
    %186 = vector.extract_strided_slice %129 {offsets = [0, 48], sizes = [17, 16], strides = [1, 1]} : vector<17x64xf32> to vector<17x16xf32>
    %187 = arith.truncf %186 : vector<17x16xf32> to vector<17x16xbf16>
    %188 = vector.extract_strided_slice %132 {offsets = [48, 0], sizes = [16, 17], strides = [1, 1]} : vector<64x17xbf16> to vector<16x17xbf16>
    %cst_62 = arith.constant dense<0.000000e+00> : vector<17x17xf32>
    %189 = tpu.matmul %187, %188, %cst_62 {dimension_numbers = #tpu.dot_dimension_numbers<[1], [0], [0], [1], [0, 0, 1, 1], [], []>} : vector<17x16xbf16>, vector<16x17xbf16>, vector<17x17xf32> -> vector<17x17xf32>
    %cst_63 = arith.constant dense<0xFF800000> : vector<17xf32>
    %190 = vector.multi_reduction <maximumf>, %189, %cst_63 [1] : vector<17x17xf32> to vector<17xf32>
    %191 = vector.shape_cast %190 : vector<17xf32> to vector<17x1xf32>
    %192 = vector.broadcast %191 : vector<17x1xf32> to vector<17x17xf32>
    %193 = arith.subf %189, %192 : vector<17x17xf32>
    %194 = math.exp %193 : vector<17x17xf32>
    %cst_64 = arith.constant dense<0.000000e+00> : vector<17xf32>
    %195 = vector.multi_reduction <add>, %194, %cst_64 [1] : vector<17x17xf32> to vector<17xf32>
    %196 = vector.shape_cast %195 : vector<17xf32> to vector<17x1xf32>
    %197 = tpu.reciprocal %196 {approx = true} : vector<17x1xf32> -> vector<17x1xf32>
    %198 = vector.broadcast %197 : vector<17x1xf32> to vector<17x17xf32>
    %199 = arith.mulf %194, %198 : vector<17x17xf32>
    %200 = arith.truncf %199 : vector<17x17xf32> to vector<17x17xbf16>
    %201 = vector.extract_strided_slice %134 {offsets = [0, 48], sizes = [17, 16], strides = [1, 1]} : vector<17x64xbf16> to vector<17x16xbf16>
    %cst_65 = arith.constant dense<0.000000e+00> : vector<17x16xf32>
    %202 = tpu.matmul %200, %201, %cst_65 {dimension_numbers = #tpu.dot_dimension_numbers<[1], [0], [0], [1], [0, 0, 1, 1], [], []>} : vector<17x17xbf16>, vector<17x16xbf16>, vector<17x16xf32> -> vector<17x16xf32>
    %203 = tpu.concatenate %151, %168, %185, %202 in 1 : vector<17x16xf32>, vector<17x16xf32>, vector<17x16xf32>, vector<17x16xf32> -> vector<17x64xf32>
    %204 = tpu.concatenate %128, %203 in 0 : vector<17x64xf32>, vector<17x64xf32> -> vector<34x64xf32>
    %205 = arith.truncf %204 : vector<34x64xf32> to vector<34x64xbf16>
    %cst_66 = arith.constant dense<0.000000e+00> : vector<34x32xf32>
    %206 = tpu.matmul %205, %22, %cst_66 {dimension_numbers = #tpu.dot_dimension_numbers<[1], [0], [0], [1], [0, 0, 1, 1], [], []>} : vector<34x64xbf16>, vector<64x32xbf16>, vector<34x32xf32> -> vector<34x32xf32>
    %207 = arith.addf %27, %206 : vector<34x32xf32>
    %208 = vector.broadcast %7 : vector<1x32xf32> to vector<34x32xf32>
    %209 = arith.addf %207, %208 : vector<34x32xf32>
    %cst_67 = arith.constant dense<0.000000e+00> : vector<34xf32>
    %210 = vector.multi_reduction <add>, %209, %cst_67 [1] : vector<34x32xf32> to vector<34xf32>
    %211 = vector.shape_cast %210 : vector<34xf32> to vector<34x1xf32>
    %cst_68 = arith.constant 3.200000e+01 : f32
    %212 = vector.broadcast %cst_68 : f32 to vector<34x1xf32>
    %213 = arith.divf %211, %212 : vector<34x1xf32>
    %214 = vector.broadcast %213 : vector<34x1xf32> to vector<34x32xf32>
    %215 = arith.subf %209, %214 : vector<34x32xf32>
    %216 = arith.mulf %215, %215 : vector<34x32xf32>
    %cst_69 = arith.constant dense<0.000000e+00> : vector<34xf32>
    %217 = vector.multi_reduction <add>, %216, %cst_69 [1] : vector<34x32xf32> to vector<34xf32>
    %218 = vector.shape_cast %217 : vector<34xf32> to vector<34x1xf32>
    %cst_70 = arith.constant 3.200000e+01 : f32
    %219 = vector.broadcast %cst_70 : f32 to vector<34x1xf32>
    %220 = arith.divf %218, %219 : vector<34x1xf32>
    %cst_71 = arith.constant 9.99999974E-6 : f32
    %221 = vector.broadcast %cst_71 : f32 to vector<34x1xf32>
    %222 = arith.addf %220, %221 : vector<34x1xf32>
    %223 = math.rsqrt %222 : vector<34x1xf32>
    %224 = vector.broadcast %223 : vector<34x1xf32> to vector<34x32xf32>
    %225 = arith.mulf %215, %224 : vector<34x32xf32>
    %226 = vector.broadcast %8 : vector<1x32xf32> to vector<34x32xf32>
    %227 = arith.mulf %225, %226 : vector<34x32xf32>
    %228 = vector.broadcast %9 : vector<1x32xf32> to vector<34x32xf32>
    %229 = arith.addf %227, %228 : vector<34x32xf32>
    %230 = arith.truncf %229 : vector<34x32xf32> to vector<34x32xbf16>
    %cst_72 = arith.constant dense<0.000000e+00> : vector<34x64xf32>
    %231 = tpu.matmul %230, %24, %cst_72 {dimension_numbers = #tpu.dot_dimension_numbers<[1], [0], [0], [1], [0, 0, 1, 1], [], []>} : vector<34x32xbf16>, vector<32x64xbf16>, vector<34x64xf32> -> vector<34x64xf32>
    %232 = vector.broadcast %14 : vector<1x64xf32> to vector<34x64xf32>
    %233 = arith.addf %231, %232 : vector<34x64xf32>
    %cst_73 = arith.constant 5.000000e-01 : f32
    %234 = vector.broadcast %cst_73 : f32 to vector<34x64xf32>
    %235 = arith.mulf %234, %233 : vector<34x64xf32>
    %cst_74 = arith.constant 0.707106769 : f32
    %236 = vector.broadcast %cst_74 : f32 to vector<34x64xf32>
    %237 = arith.mulf %233, %236 : vector<34x64xf32>
    %238 = math.erf %237 : vector<34x64xf32>
    %cst_75 = arith.constant 1.000000e+00 : f32
    %239 = vector.broadcast %cst_75 : f32 to vector<34x64xf32>
    %240 = arith.addf %239, %238 : vector<34x64xf32>
    %241 = arith.mulf %235, %240 : vector<34x64xf32>
    %242 = arith.truncf %241 : vector<34x64xf32> to vector<34x64xbf16>
    %cst_76 = arith.constant dense<0.000000e+00> : vector<34x32xf32>
    %243 = tpu.matmul %242, %26, %cst_76 {dimension_numbers = #tpu.dot_dimension_numbers<[1], [0], [0], [1], [0, 0, 1, 1], [], []>} : vector<34x64xbf16>, vector<64x32xbf16>, vector<34x32xf32> -> vector<34x32xf32>
    %244 = arith.addf %209, %243 : vector<34x32xf32>
    %245 = vector.broadcast %10 : vector<1x32xf32> to vector<34x32xf32>
    %246 = arith.addf %244, %245 : vector<34x32xf32>
    %cst_77 = arith.constant dense<0.000000e+00> : vector<34xf32>
    %247 = vector.multi_reduction <add>, %246, %cst_77 [1] : vector<34x32xf32> to vector<34xf32>
    %248 = vector.shape_cast %247 : vector<34xf32> to vector<34x1xf32>
    %cst_78 = arith.constant 3.200000e+01 : f32
    %249 = vector.broadcast %cst_78 : f32 to vector<34x1xf32>
    %250 = arith.divf %248, %249 : vector<34x1xf32>
    %251 = vector.broadcast %250 : vector<34x1xf32> to vector<34x32xf32>
    %252 = arith.subf %246, %251 : vector<34x32xf32>
    %253 = arith.mulf %252, %252 : vector<34x32xf32>
    %cst_79 = arith.constant dense<0.000000e+00> : vector<34xf32>
    %254 = vector.multi_reduction <add>, %253, %cst_79 [1] : vector<34x32xf32> to vector<34xf32>
    %255 = vector.shape_cast %254 : vector<34xf32> to vector<34x1xf32>
    %cst_80 = arith.constant 3.200000e+01 : f32
    %256 = vector.broadcast %cst_80 : f32 to vector<34x1xf32>
    %257 = arith.divf %255, %256 : vector<34x1xf32>
    %cst_81 = arith.constant 9.99999974E-6 : f32
    %258 = vector.broadcast %cst_81 : f32 to vector<34x1xf32>
    %259 = arith.addf %257, %258 : vector<34x1xf32>
    %260 = math.rsqrt %259 : vector<34x1xf32>
    %261 = vector.broadcast %260 : vector<34x1xf32> to vector<34x32xf32>
    %262 = arith.mulf %252, %261 : vector<34x32xf32>
    %263 = vector.broadcast %11 : vector<1x32xf32> to vector<34x32xf32>
    %264 = arith.mulf %262, %263 : vector<34x32xf32>
    %265 = vector.broadcast %12 : vector<1x32xf32> to vector<34x32xf32>
    %266 = arith.addf %264, %265 : vector<34x32xf32>
    %c0_82 = arith.constant 0 : index
    %c0_83 = arith.constant 0 : index
    %267 = vector.load %arg11[%c0_82, %c0_83] : memref<34x32xf32, #tpu.memory_space<vmem>>, vector<34x32xf32>
    tpu.vector_store %arg11[%c0_82, %c0_83], %266 {strides = array<i32>} : memref<34x32xf32, #tpu.memory_space<vmem>>, vector<34x32xf32>,
    %c1_i32 = arith.constant 1 : i32
    %268 = arith.cmpi eq, %arg0, %c1_i32 : i32
    %269 = arith.extui %268 : i1 to i32
    %c0_i32_84 = arith.constant 0 : i32
    %270 = arith.cmpi ne, %269, %c0_i32_84 : i32
    scf.if %270 {
      %271 = vector.extract_strided_slice %266 {offsets = [0, 0], sizes = [1, 32], strides = [1, 1]} : vector<34x32xf32> to vector<1x32xf32>
      %c0_85 = arith.constant 0 : index
      %c0_86 = arith.constant 0 : index
      %272 = vector.load %arg10[%c0_85, %c0_86] : memref<2x32xf32, #tpu.memory_space<vmem>>, vector<1x32xf32>
      tpu.vector_store %arg10[%c0_85, %c0_86], %271 {strides = array<i32>} : memref<2x32xf32, #tpu.memory_space<vmem>>, vector<1x32xf32>,
      %273 = vector.extract_strided_slice %266 {offsets = [17, 0], sizes = [1, 32], strides = [1, 1]} : vector<34x32xf32> to vector<1x32xf32>
      %c1 = arith.constant 1 : index
      %c0_87 = arith.constant 0 : index
      %274 = vector.load %arg10[%c1, %c0_87] : memref<2x32xf32, #tpu.memory_space<vmem>>, vector<1x32xf32>
      tpu.vector_store %arg10[%c1, %c0_87], %273 {strides = array<i32>} : memref<2x32xf32, #tpu.memory_space<vmem>>, vector<1x32xf32>,
    } else {
    }
    return
  }
  func.func @transform_0(%arg0: i32) -> (i32, i32) {
    %c0_i32 = arith.constant 0 : i32
    %c0_i32_0 = arith.constant 0 : i32
    %c0_i32_1 = arith.constant 0 : i32
    return %c0_i32, %c0_i32_0 : i32, i32
  }
  func.func @transform_1(%arg0: i32) -> (i32, i32, i32) {
    %c0_i32 = arith.constant 0 : i32
    %c0_i32_0 = arith.constant 0 : i32
    %c0_i32_1 = arith.constant 0 : i32
    return %arg0, %c0_i32, %c0_i32_0 : i32, i32, i32
  }
  func.func @transform_2(%arg0: i32) -> (i32, i32, i32) {
    %c0_i32 = arith.constant 0 : i32
    %c0_i32_0 = arith.constant 0 : i32
    %c0_i32_1 = arith.constant 0 : i32
    return %arg0, %c0_i32, %c0_i32_0 : i32, i32, i32
  }
  func.func @transform_3(%arg0: i32) -> (i32, i32, i32) {
    %c0_i32 = arith.constant 0 : i32
    %c0_i32_0 = arith.constant 0 : i32
    %c0_i32_1 = arith.constant 0 : i32
    return %arg0, %c0_i32, %c0_i32_0 : i32, i32, i32
  }
  func.func @transform_4(%arg0: i32) -> (i32, i32, i32) {
    %c0_i32 = arith.constant 0 : i32
    %c0_i32_0 = arith.constant 0 : i32
    %c0_i32_1 = arith.constant 0 : i32
    return %arg0, %c0_i32, %c0_i32_0 : i32, i32, i32
  }
  func.func @transform_5(%arg0: i32) -> (i32, i32, i32) {
    %c0_i32 = arith.constant 0 : i32
    %c0_i32_0 = arith.constant 0 : i32
    %c0_i32_1 = arith.constant 0 : i32
    return %arg0, %c0_i32, %c0_i32_0 : i32, i32, i32
  }
  func.func @transform_6(%arg0: i32) -> (i32, i32, i32) {
    %c0_i32 = arith.constant 0 : i32
    %c0_i32_0 = arith.constant 0 : i32
    %c0_i32_1 = arith.constant 0 : i32
    return %arg0, %c0_i32, %c0_i32_0 : i32, i32, i32
  }
  func.func @transform_7(%arg0: i32) -> (i32, i32, i32) {
    %c0_i32 = arith.constant 0 : i32
    %c0_i32_0 = arith.constant 0 : i32
    %c0_i32_1 = arith.constant 0 : i32
    return %arg0, %c0_i32, %c0_i32_0 : i32, i32, i32
  }
  func.func @transform_8(%arg0: i32) -> (i32, i32, i32) {
    %c0_i32 = arith.constant 0 : i32
    %c0_i32_0 = arith.constant 0 : i32
    %c0_i32_1 = arith.constant 0 : i32
    return %arg0, %c0_i32, %c0_i32_0 : i32, i32, i32
  }
  func.func @transform_9(%arg0: i32) -> (i32, i32) {
    %c0_i32 = arith.constant 0 : i32
    %c0_i32_0 = arith.constant 0 : i32
    %c0_i32_1 = arith.constant 0 : i32
    return %c0_i32, %c0_i32_0 : i32, i32
  }
}

</mosaic_0001>

<bundles_post_ra>
// kernel: multimodality_encoder_classic.1
= control target key start
LH: loop header
LB: loop body
LE: loop exit
PB: predicated region body
PF: predicated region fallthrough
CT: control target
= control target key end

     0   :  { %14 = vsyncpa [#allocation4], 0  ;;  %s3113_s30 = smov 0   ;;  %s3947_s0 = inlined_call_operand.vmem [shape: f32[34,32], index: 0, kind: input, shape index: {}]   ;;  %s3948_s1 = inlined_call_operand.vmem [shape: f32[2,8,32], index: 1, kind: input, shape index: {}]   ;;  %s3949_s2 = inlined_call_operand.vmem [shape: f32[2,1,64], index: 2, kind: input, shape index: {}]   ;;  %s3950_s3 = inlined_call_operand.vmem [shape: bf16[2,32,64], index: 3, kind: input, shape index: {}]   ;;  %s3951_s4 = inlined_call_operand.vmem [shape: bf16[2,32,64], index: 4, kind: input, shape index: {}]   ;;  %s3952_s5 = inlined_call_operand.vmem [shape: bf16[2,32,64], index: 5, kind: input, shape index: {}]   ;;  %s3953_s6 = inlined_call_operand.vmem [shape: bf16[2,64,32], index: 6, kind: input, shape index: {}]   ;;  %s3954_s7 = inlined_call_operand.vmem [shape: bf16[2,32,64], index: 7, kind: input, shape index: {}]   ;;  %s3955_s8 = inlined_call_operand.vmem [shape: bf16[2,64,32], index: 8, kind: input, shape index: {}]   ;;  %s3956_s9 = inlined_call_operand.hbm [shape: f32[2,32], index: 9, kind: output, shape index: {}]  }
   0x1 LB: > { %s3119_s10 = sadd.s32 4294967295, %s3052_s30   ;;  %p2606_p0 = scmp.ge.s32.totalorder %s3052_s30, 1  ;;  %s3052_s30 = sphi %s3113_s30, %s20_s30  }
   0x2   : > { %p350_p1 = scmp.lt.s32.totalorder %s3052_s30, 3 }
   0x4   : > { %p351_p2 = pnand %p2606_p0, %p350_p1 }
   0x5   : > { %p413_p3 = scmp.lt.s32.totalorder (!%p351_p2), %s3119_s10, 1  ;;  %p2620_p4 = scmp.ne.s32.totalorder (!%p351_p2), %s3119_s10, 0 }
   0x6   : > { %354 = sbr.rel (%p351_p2) target bundleno = 2512 (0x9d0), region = 56 }
   0xb   : > { %s3125_s11 = scalar_select %p413_p3, %s3119_s10, 1 }
   0xd   : > { %s2607_s12 = sshll.u32 %s3125_s11, 3  ;;  %s419_s15 = scalar_lea.vmem %s3949_s2, %s3125_s11 }
   0xe   : > { %s3135_s18 = scalar_lea.vmem %s3948_s1, %s2607_s12  ;;  %s2745_s19 = sshll.u32 %s3125_s11, 4 }
   0xf   : > { %s3141_s22 = scalar_lea.vmem %s3950_s3, %s2745_s19  ;;  %s3146_s25 = scalar_lea.vmem %s3951_s4, %s2745_s19 }
  0x10   : > { %s3151_s28 = scalar_lea.vmem %s3952_s5, %s2745_s19  ;;  %s2748_s29 = sshll.u32 %s3125_s11, 5 }
  0x11   : > { %s3157_s14 = scalar_lea.vmem %s3953_s6, %s2748_s29  ;;  %s3162_s20 = scalar_lea.vmem %s3954_s7, %s2745_s19 }
  0x12   : > { %s3167_s24 = scalar_lea.vmem %s3955_s8, %s2748_s29  ;;  %454 = sbr.rel (%p2620_p4) target bundleno = 29 (0x1d), region = 60 }
  0x17   : > { %v455_v0 = vld [vmem:[%s3947_s0] sm:$0xff]  ;;  %vm460_vm0 = vcmask 261120   ;;  %v456_v1 = vld [vmem:[%s3947_s0 + $0x8] sm:$0xff]  ;;  %v457_v2 = vld [vmem:[%s3947_s0 + $0x10] sm:$0xff]  ;;  %vm465_vm1 = vcmask 254976  }
  0x18   : > { %461 = vst.msk [vmem:[#allocation2] sm:$0xff] %vm460_vm0, %v455_v0  ;;  %v458_v3 = vld [vmem:[%s3947_s0 + $0x18] sm:$0xff]  ;;  %v459_v4 = vld [vmem:[%s3947_s0 + $0x20] sm:$0x3] }
  0x19   : > { %462 = vst.msk [vmem:[#allocation2 + $0x8] sm:$0xff] %vm460_vm0, %v456_v1 }
  0x1a   : > { %463 = vst.msk [vmem:[#allocation2 + $0x10] sm:$0xff] %vm460_vm0, %v457_v2 }
  0x1b   : > { %464 = vst.msk [vmem:[#allocation2 + $0x18] sm:$0xff] %vm460_vm0, %v458_v3 }
  0x1c   : > { %466 = vst.msk [vmem:[#allocation2 + $0x20] sm:$0x3] %vm465_vm1, %v459_v4 }
  0x1d PF: > { %vm519_vm2 = vcmask 254976   ;;  %vm506_vm3 = vcmask 261120   ;;  %v3054_v15 = vmov 32.0   ;;  %v2752_v47 = vld [vmem:[%s3141_s22 + $0x8] sm:$0xff]  ;;  %v2751_v53 = vld [vmem:[%s3141_s22] sm:$0xff]  ;;  %s3055_s22 = smov 112  }
  0x1e   : > { %2870 = vrcp.f32 %v3054_v15  ;;  %2767 = vmatpush.bf16.msra.mxu1 %v2752_v47  ;;  %667 = vmatpush.bf16.msra.mxu0 %v2752_v47  ;;  %v2756_v55 = vld [vmem:[%s3151_s28 + $0x8] sm:$0xff]  ;;  %v2755_v60 = vld [vmem:[%s3151_s28] sm:$0xff]  ;;  %s3057_s28 = smov 96   ;;  %s3059_s26 = smov 16  }
  0x1f   : > { %v501_v12 = vld [vmem:[#allocation2] sm:$0xff]  ;;  %742 = vmatpush.bf16.msra.mxu2 %v2756_v55  ;;  %s3060_s27 = smov 32   ;;  %s3061_s13 = smov 48  }
  0x20   : > { %v502_v9 = vld [vmem:[#allocation2 + $0x8] sm:$0xff]  ;;  %v507_v14 = vsel %vm506_vm3, %v501_v12, 0.0  ;;  %p2740_p5 = scmp.ne.s32.totalorder %s3119_s10, 1 }
  0x21   : > { %v503_v6 = vld [vmem:[#allocation2 + $0x10] sm:$0xff]  ;;  %v510_v10 = vsel %vm506_vm3, %v502_v9, 0.0 }
  0x22   : > { %v513_v8 = vsel %vm506_vm3, %v503_v6, 0.0  ;;  %511 = vadd.xlane.f32.xlu2 %v510_v10  ;;  %v504_v11 = vld [vmem:[#allocation2 + $0x18] sm:$0xff]  ;;  %2768 = vmatpush.bf16.msra.mxu1 %v2751_v53 }
  0x23   : > { %v505_v5 = vld [vmem:[#allocation2 + $0x20] sm:$0x3]  ;;  %514 = vadd.xlane.f32.xlu0 %v513_v8  ;;  %v516_v13 = vsel %vm506_vm3, %v504_v11, 0.0  ;;  %668 = vmatpush.bf16.msra.mxu0 %v2751_v53 }
  0x24   : > { %v520_v7 = vsel %vm519_vm2, %v505_v5, 0.0  ;;  %v2871_v16 = vpop.eup %2870  ;;  %743 = vmatpush.bf16.msra.mxu2 %v2755_v60 }
  0x25   : > { %521 = vadd.xlane.f32.xlu1 %v520_v7  ;;  %v524_v17 = vmul.f32 32.0, %v2871_v16  ;;  %vm528_vm4 = vweird.f32 %v2871_v16 }
  0x27   : > { %v525_v18 = vsub.f32 1.0, %v524_v17 }
  0x29   : > { %v526_v19 = vmul.f32 %v2871_v16, %v525_v18 }
  0x2b   : > { %517 = vadd.xlane.f32.xlu0 %v516_v13  ;;  %v527_v20 = vadd.f32 %v2871_v16, %v526_v19  ;;  %v467_v19 = vld [vmem:[%s3135_s18] sm:$0xff] }
  0x2d   : > { %508 = vadd.xlane.f32.xlu1 %v507_v14  ;;  %v3190_v21 = vsel %vm528_vm4, %v2871_v16, %v527_v20 }
  0x95   : > { %v512_v30 = vpop.xlane.xlu2 %511 }
  0x96   : > { %v515_v23 = vpop.xlane.xlu0 %514  ;;  %v531_v37 = vmul.f32 %v3190_v21, %v512_v30 }
  0x97   : > { %v532_v25 = vmul.f32 %v3190_v21, %v515_v23 }
  0x98   : > { %v522_v22 = vpop.xlane.xlu1 %521  ;;  %v3213_v41 = vsub.f32 %v502_v9, %v531_v37  ;;  %v631_v37 = vperm.slane %v467_v19, 1 }
  0x99   : > { %v534_v24 = vmul.f32 %v3190_v21, %v522_v22  ;;  %v3196_v27 = vsub.f32 %v503_v6, %v532_v25 }
  0x9a   : > { %v541_v45 = vmul.f32 %v3213_v41, %v3213_v41 }
  0x9b   : > { %v3194_v26 = vsub.f32 %v505_v5, %v534_v24  ;;  %v542_v28 = vmul.f32 %v3196_v27, %v3196_v27 }
  0x9c   : > { %v548_v46 = vsel %vm506_vm3, %v541_v45, 0.0 }
  0x9d   : > { %v544_v29 = vmul.f32 %v3194_v26, %v3194_v26  ;;  %v551_v31 = vsel %vm506_vm3, %v542_v28, 0.0 }
  0x9e   : > { %v518_v33 = vpop.xlane.xlu0 %517  ;;  %552 = vadd.xlane.f32.xlu2 %v551_v31 }
  0x9f   : > { %v557_v32 = vsel %vm519_vm2, %v544_v29, 0.0  ;;  %v533_v35 = vmul.f32 %v3190_v21, %v518_v33  ;;  %v625_v29 = vperm.slane %v467_v19, 0 }
  0xa0   : > { %558 = vadd.xlane.f32.xlu1 %v557_v32  ;;  %v509_v34 = vpop.xlane.xlu1 %508 }
  0xa1   : > { %v530_v36 = vmul.f32 %v3190_v21, %v509_v34  ;;  %v3207_v38 = vsub.f32 %v504_v11, %v533_v35 }
  0xa3   : > { %v3209_v39 = vsub.f32 %v501_v12, %v530_v36  ;;  %v543_v40 = vmul.f32 %v3207_v38, %v3207_v38 }
  0xa5   : > { %v540_v42 = vmul.f32 %v3209_v39, %v3209_v39  ;;  %v554_v43 = vsel %vm506_vm3, %v543_v40, 0.0 }
  0xa6   : > { %555 = vadd.xlane.f32.xlu0 %v554_v43 }
  0xa7   : > { %v545_v44 = vsel %vm506_vm3, %v540_v42, 0.0  ;;  %v2754_v42 = vld [vmem:[%s3146_s25 + $0x8] sm:$0xff] }
  0xa8   : > { %546 = vadd.xlane.f32.xlu2 %v545_v44  ;;  %707 = vmatpush.bf16.msrb.mxu1 %v2754_v42 }
  0xae   : > { %549 = vadd.xlane.f32.xlu0 %v548_v46  ;;  %v2753_v46 = vld [vmem:[%s3146_s25] sm:$0xff]  ;;  %s3056_s25 = smov 80  }
  0xaf   : > { %708 = vmatpush.bf16.msrb.mxu1 %v2753_v46 }
 0x111   : > { %v553_v48 = vpop.xlane.xlu2 %552 }
 0x112   : > { %v562_v50 = vmul.f32 %v553_v48, %v3190_v21 }
 0x113   : > { %v559_v49 = vpop.xlane.xlu1 %558 }
 0x114   : > { %v564_v51 = vmul.f32 %v559_v49, %v3190_v21  ;;  %v567_v52 = vadd.f32 1e-05, %v562_v50 }
 0x116   : > { %2872 = vrsqrt.f32 %v567_v52  ;;  %v3226_v54 = vadd.f32 1e-05, %v564_v51  ;;  %vm596_vm6 = vweird.f32 %v567_v52 }
 0x118   : > { %2874 = vrsqrt.f32 %v3226_v54  ;;  %vm616_vm14 = vweird.f32 %v3226_v54 }
 0x119   : > { %v556_v56 = vpop.xlane.xlu0 %555 }
 0x11a   : > { %v563_v58 = vmul.f32 %v556_v56, %v3190_v21 }
 0x11b   : > { %v547_v57 = vpop.xlane.xlu2 %546 }
 0x11c   : > { %v560_v59 = vmul.f32 %v547_v57, %v3190_v21  ;;  %v2873_v61 = vpop.eup %2872  ;;  %v568_v62 = vadd.f32 1e-05, %v563_v58 }
 0x11d   : > { %v591_v0 = vmul.f32 %v2873_v61, %v567_v52  ;;  %vm597_vm5 = vweird.f32 %v2873_v61 }
 0x11e   : > { %v565_v63 = vadd.f32 1e-05, %v560_v59  ;;  %2876 = vrsqrt.f32 %v568_v62  ;;  %v3233_v2 = vpop.eup %2874  ;;  %vm598_vm7 = vmor %vm596_vm6, %vm597_vm5  ;;  %vm606_vm11 = vweird.f32 %v568_v62  ;;  %vm1318_vm6 = vsmask.f32 7424 }
 0x11f   : > { %v592_v1 = vmul.f32 %v2873_v61, %v591_v0  ;;  %v611_v7 = vmul.f32 %v3233_v2, %v3226_v54  ;;  %vm617_vm15 = vweird.f32 %v3233_v2 }
 0x120   : > { %2878 = vrsqrt.f32 %v565_v63  ;;  %vm576_vm9 = vweird.f32 %v565_v63  ;;  %vm618_vm4 = vmor %vm616_vm14, %vm617_vm15 }
 0x121   : > { %v593_v3 = vmul.f32 0.5, %v592_v1  ;;  %v550_v4 = vpop.xlane.xlu0 %549  ;;  %v612_v14 = vmul.f32 %v3233_v2, %v611_v7 }
 0x122   : > { %v561_v5 = vmul.f32 %v550_v4, %v3190_v21 }
 0x123   : > { %v594_v6 = vsub.f32 1.5, %v593_v3  ;;  %v613_v22 = vmul.f32 0.5, %v612_v14 }
 0x124   : > { %v2877_v8 = vpop.eup %2876  ;;  %v566_v9 = vadd.f32 1e-05, %v561_v5 }
 0x125   : > { %v595_v11 = vmul.f32 %v2873_v61, %v594_v6  ;;  %v601_v12 = vmul.f32 %v2877_v8, %v568_v62  ;;  %vm607_vm8 = vweird.f32 %v2877_v8  ;;  %v614_v34 = vsub.f32 1.5, %v613_v22 }
 0x126   : > { %v2879_v10 = vpop.eup %2878  ;;  %2880 = vrsqrt.f32 %v566_v9  ;;  %vm608_vm12 = vmor %vm606_vm11, %vm607_vm8  ;;  %vm586_vm0 = vweird.f32 %v566_v9  ;;  %vm887_vm8 = vcmask 1040384   ;;  %vm842_vm11 = vcmask 131072  }
 0x127   : > { %v571_v13 = vmul.f32 %v2879_v10, %v565_v63  ;;  %v602_v15 = vmul.f32 %v2877_v8, %v601_v12  ;;  %v599_v17 = vsel %vm598_vm7, %v2873_v61, %v595_v11  ;;  %vm577_vm10 = vweird.f32 %v2879_v10 }
 0x128   : > { %v622_v25 = vmul.f32 %v599_v17, %v3196_v27  ;;  %vm3241_vm13 = vmor %vm576_vm9, %vm577_vm10  ;;  %v615_v47 = vmul.f32 %v3233_v2, %v614_v34  ;;  %vm1265_vm7 = vcmask 1046528   ;;  %vm810_vm9 = vcmask 130048  }
 0x129   : > { %v572_v16 = vmul.f32 %v2879_v10, %v571_v13  ;;  %v603_v18 = vmul.f32 0.5, %v602_v15  ;;  %vm835_vm10 = vcmask 138240  }
 0x12a   : > { %v628_v40 = vmul.f32 %v625_v29, %v622_v25  ;;  %v619_v53 = vsel %vm618_vm4, %v3233_v2, %v615_v47 }
 0x12b   : > { %v573_v20 = vmul.f32 0.5, %v572_v16  ;;  %v604_v23 = vsub.f32 1.5, %v603_v18  ;;  %v624_v58 = vmul.f32 %v619_v53, %v3194_v26 }
 0x12c   : > { %v2881_v24 = vpop.eup %2880  ;;  %v634_v50 = vadd.f32 %v631_v37, %v628_v40 }
 0x12d   : > { %v574_v28 = vsub.f32 1.5, %v573_v20  ;;  %v605_v30 = vmul.f32 %v2877_v8, %v604_v23  ;;  %v581_v31 = vmul.f32 %v2881_v24, %v566_v9  ;;  %vm587_vm1 = vweird.f32 %v2881_v24 }
 0x12e   : > { %vm588_vm5 = vmor %vm586_vm0, %vm587_vm1  ;;  %v630_v61 = vmul.f32 %v625_v29, %v624_v58 }
 0x12f   : > { %v575_v32 = vmul.f32 %v2879_v10, %v574_v28  ;;  %v609_v35 = vsel %vm608_vm12, %v2877_v8, %v605_v30  ;;  %v582_v36 = vmul.f32 %v2881_v24, %v581_v31  ;;  %vm1258_vm12 = vcmask 392192  }
 0x130   : > { %v623_v27 = vmul.f32 %v609_v35, %v3207_v38  ;;  %v636_v62 = vadd.f32 %v631_v37, %v630_v61 }
 0x131   : > { %v579_v43 = vsel %vm3241_vm13, %v2879_v10, %v575_v32  ;;  %v583_v44 = vmul.f32 0.5, %v582_v36  ;;  %vm1833_vm13 = vcmask 523264  }
 0x132   : > { %v629_v45 = vmul.f32 %v625_v29, %v623_v27  ;;  %v620_v49 = vmul.f32 %v579_v43, %v3209_v39  ;;  %v639_v63 = vpack.c.bf16 %v636_v62, %v636_v62 }
 0x133   : > { %v584_v48 = vsub.f32 1.5, %v583_v44 }
 0x134   : > { %v635_v38 = vadd.f32 %v631_v37, %v629_v45  ;;  %v626_v56 = vmul.f32 %v625_v29, %v620_v49 }
 0x135   : > { %v585_v51 = vmul.f32 %v2881_v24, %v584_v48 }
 0x136   : > { %v638_v52 = vpack.c.bf16 %v635_v38, %v634_v50  ;;  %v632_v59 = vadd.f32 %v631_v37, %v626_v56 }
 0x137   : > { %v589_v54 = vsel %vm588_vm5, %v2881_v24, %v585_v51 }
 0x138   : > { %v621_v55 = vmul.f32 %v589_v54, %v3213_v41  ;;  %2630 = vmatmul.msk.bf16.vlgmr.msra.gmra.mxu1 %vm506_vm3, %v638_v52 }
 0x13a   : > { %v627_v57 = vmul.f32 %v625_v29, %v621_v55 }
 0x13c   : > { %v633_v60 = vadd.f32 %v631_v37, %v627_v57 }
 0x13e   : > { %v637_v39 = vpack.c.bf16 %v633_v60, %v632_v59 }
 0x140   : > { %2629 = vmatmul.msk.bf16.vlgmr.msra.gmra.mxu0 %vm506_vm3, %v637_v39  ;;  %2651 = vmatmul.msk.bf16.vlgmr.msra.gmra.mxu2 %vm506_vm3, %v637_v39 }
 0x148   : > { %2631 = vmatmul.msk.bf16.gmra.mxu1 %vm506_vm3, %v639_v63 }
 0x150   : > { %2652 = vmatmul.msk.bf16.gmra.mxu2 %vm506_vm3, %v638_v52 }
 0x158   : > { %2640 = vmatmul.msk.bf16.vlgmr.msrb.gmra.mxu1 %vm506_vm3, %v637_v39 }
 0x160   : > { %2653 = vmatmul.msk.bf16.gmra.mxu2 %vm506_vm3, %v639_v63 }
 0x168   : > { %2641 = vmatmul.msk.bf16.gmra.mxu1 %vm506_vm3, %v638_v52 }
 0x178   : > { %2642 = vmatmul.msk.bf16.gmra.mxu1 %vm506_vm3, %v639_v63 }
 0x1b5   : > { %v675_v26 = vpop.f32.mrf.mxu1 }
 0x1b6   : > { %v686_v41 = vmul.f32 0.25, %v675_v26 }
 0x1b8   : > { %v3266_v0 = vpack.c.bf16 %v686_v41, %v686_v41 }
 0x1ba   : > { %915 = vrot.lane.b32.xlu0 %v3266_v0, %s3055_s22 }
 0x1bd   : > { %v670_v1 = vpop.f32.mrf.mxu0  ;;  %v677_v2 = vpop.f32.mrf.mxu1 }
 0x1be   : > { %v684_v6 = vmul.f32 0.25, %v670_v1  ;;  %v687_v11 = vmul.f32 0.25, %v677_v2 }
 0x1c0   : > { %v1316_v13 = vpack.c.bf16 %v687_v11, %v686_v41 }
 0x1c2   : > { %v1322_v17 = vshll.u32 %v1316_v13, 16  ;;  %v1320_v25 = vshrl.u32 %v1316_v13, 16 }
 0x1c3   : > { %v3270_v3 = vpop.f32.mrf.mxu2 }
 0x1c4   : > { %v1324_v22 = vrot.slane %v1322_v17, 1  ;;  %v799_v56 = vpack.c.bf16 %v3270_v3, %v3270_v3 }
 0x1c5   : > { %v672_v4 = vpop.f32.mrf.mxu0  ;;  %v680_v5 = vpop.f32.mrf.mxu1 }
 0x1c6   : > { %v685_v7 = vmul.f32 0.25, %v672_v4  ;;  %v688_v12 = vmul.f32 0.25, %v680_v5  ;;  %v1325_v32 = vor.u32 %v1324_v22, %v1320_v25  ;;  %v875_v59 = vunpack.c.l.b16 %v799_v56 }
 0x1c8   : > { %v3272_v8 = vpack.c.bf16 %v685_v7, %v684_v6  ;;  %v1317_v15 = vpack.c.bf16 %v688_v12, %v688_v12  ;;  %v3058_v12 = vmov 0  }
 0x1c9   : > { %v3337_v13 = vsel %vm887_vm8, 65535, %v3058_v12 }
 0x1ca   : > { %1115 = vrot.lane.b32.xlu0 %v3272_v8, %s3056_s25  ;;  %913 = vrot.lane.b32.xlu2 %v3272_v8, %s3055_s22  ;;  %v3282_v18 = vshrl.u32 %v1317_v15, 16  ;;  %v1327_v19 = vshll.u32 %v1317_v15, 16 }
 0x1cb   : > { %v747_v9 = vpop.f32.mrf.mxu2 }
 0x1cc   : > { %v1329_v28 = vrot.slane %v1327_v19, 1  ;;  %v800_v52 = vpack.c.bf16 %v747_v9, %v747_v9 }
 0x1cd   : > { %v682_v10 = vpop.f32.mrf.mxu1 }
 0x1ce   : > { %v3289_v34 = vsel %vm1318_vm6, %v1325_v32, %v1329_v28  ;;  %v876_v57 = vunpack.c.l.b16 %v800_v52 }
 0x1d0   : > { %v878_v39 = vpack.c.b16 %v876_v57, %v875_v59 }
 0x1d2   : > { %1117 = vrot.lane.b32.xlu0 %v3266_v0, %s3056_s25  ;;  %1014 = vrot.lane.b32.xlu2 %v3272_v8, %s3057_s28 }
 0x1d3   : > { %v750_v14 = vpop.f32.mrf.mxu2 }
 0x1d4   : > { %v801_v20 = vpack.c.bf16 %v750_v14, %v750_v14 }
 0x1d5   : > { %v710_v16 = vpop.f32.mrf.mxu1 }
 0x1d6   : > { %v877_v30 = vunpack.c.l.b16 %v801_v20 }
 0x1d8   : > { %v879_v53 = vpack.c.b16 %v877_v30, %v877_v30 }
 0x1da   : > { %1448 = vrot.lane.b32.xlu0 %v3282_v18, %s3055_s22  ;;  %1016 = vrot.lane.b32.xlu2 %v3266_v0, %s3057_s28 }
 0x1db   : > { %v752_v23 = vpop.f32.mrf.mxu2 }
 0x1dc   : > { %v1314_v24 = vpack.c.bf16 %v752_v23, %v752_v23 }
 0x1dd   : > { %v712_v29 = vpop.f32.mrf.mxu1 }
 0x1de   : > { %v1400_v31 = vunpack.c.l.b16 %v1314_v24 }
 0x1e0   : > { %v1402_v33 = vpack.c.b16 %v1400_v31, %v877_v30 }
 0x1e2   : > { %1648 = vrot.lane.b32.xlu0 %v3289_v34, %s3056_s25  ;;  %1446 = vrot.lane.b32.xlu2 %v3289_v34, %s3055_s22  ;;  %v1407_v36 = vshll.u32 %v1402_v33, 16  ;;  %v1405_v44 = vshrl.u32 %v1402_v33, 16 }
 0x1e3   : > { %v755_v35 = vpop.f32.mrf.mxu2 }
 0x1e4   : > { %v1315_v37 = vpack.c.bf16 %v755_v35, %v755_v35  ;;  %v1409_v42 = vrot.slane %v1407_v36, 1 }
 0x1e5   : > { %v715_v27 = vpop.f32.mrf.mxu1 }
 0x1e6   : > { %v1401_v40 = vunpack.c.l.b16 %v1315_v37  ;;  %v1410_v47 = vor.u32 %v1409_v42, %v1405_v44  ;;  %v1266_v50 = vrot.slane %v715_v27, 1  ;;  %v891_v37 = vand.u32 %v3337_v13, %v879_v53 }
 0x1e8   : > { %v3295_v43 = vpack.c.b16 %v1401_v40, %v1401_v40 }
 0x1ea   : > { %v1412_v45 = vshll.u32 %v3295_v43, 16  ;;  %1650 = vrot.lane.b32.xlu0 %v3282_v18, %s3056_s25  ;;  %1547 = vrot.lane.b32.xlu2 %v3289_v34, %s3057_s28 }
 0x1eb   : > { %v757_v46 = vpop.f32.mrf.mxu2 }
 0x1ec   : > { %v1414_v48 = vrot.slane %v1412_v45, 1 }
 0x1ed   : > { %v717_v49 = vpop.f32.mrf.mxu1 }
 0x1ee   : > { %v1267_v38 = vrot.slane %v717_v49, 1  ;;  %v3303_v51 = vsel %vm1318_vm6, %v1410_v47, %v1414_v48 }
 0x1f0   : > { %v1268_v54 = vsel %vm1265_vm7, %v1266_v50, %v1267_v38 }
 0x1f1   : > { %v2793_v55 = vpack.i.bf16 %v1268_v54, %v710_v16 }
 0x1f2   : > { %984 = vrot.lane.b32.xlu0 %v879_v53, %s3055_s22  ;;  %1549 = vrot.lane.b32.xlu2 %v3282_v18, %s3057_s28 }
 0x1f3   : > { %2794 = vxpose.xlu1.b32.start [1/3] (short) (narrow) %v2793_v55, 64 }
 0x1f5   : > { %v720_v58 = vpop.f32.mrf.mxu1 }
 0x1f6   : > { %v1269_v60 = vrot.slane %v720_v58, 1 }
 0x1f8   : > { %v1270_v61 = vsel %vm1265_vm7, %v1267_v38, %v1269_v60  ;;  %v2797_v26 = vpack.i.bf16 %v1269_v60, %v715_v27 }
 0x1f9   : > { %v2795_v62 = vpack.i.bf16 %v1270_v61, %v712_v29 }
 0x1fa   : > { %982 = vrot.lane.b32.xlu0 %v878_v39, %s3055_s22  ;;  %1085 = vrot.lane.b32.xlu2 %v879_v53, %s3057_s28 }
 0x1fb   : > { %2796 = vxpose.xlu1.b32.cont [2/3] (short) (narrow) %v2795_v62, 64 }
 0x1fd   : > { %v722_v63 = vpop.f32.mrf.mxu1 }
 0x202   : > { %1186 = vrot.lane.b32.xlu0 %v879_v53, %s3056_s25  ;;  %1184 = vrot.lane.b32.xlu2 %v878_v39, %s3056_s25 }
 0x203   : > { %2798 = vxpose.xlu1.b32.end [3/3] (short) (narrow) %v2797_v26, 64 }
 0x224   : > { %v914_v41 = vpop.permute.xlu2 %913 }
 0x22c   : > { %v3316_v1 = vpop.permute.xlu0 %915  ;;  %v3320_v3 = vpop.permute.xlu2 %1014 }
 0x234   : > { %v3324_v5 = vpop.permute.xlu2 %1016 }
 0x23c   : > { %v3318_v2 = vpop.permute.xlu0 %1115  ;;  %v3328_v7 = vpop.permute.xlu2 %1446 }
 0x244   : > { %v3322_v4 = vpop.permute.xlu0 %1117  ;;  %v3332_v10 = vpop.permute.xlu2 %1547 }
 0x24c   : > { %v3326_v6 = vpop.permute.xlu0 %1448  ;;  %v3340_v16 = vpop.permute.xlu2 %1549 }
 0x254   : > { %v3330_v9 = vpop.permute.xlu0 %1648  ;;  %v1086_v19 = vpop.permute.xlu2 %1085 }
 0x255   : > { %v1095_v27 = vand.u32 %v1086_v19, %v3337_v13 }
 0x25c   : > { %v3334_v11 = vpop.permute.xlu0 %1650  ;;  %v1185_v23 = vpop.permute.xlu2 %1184 }
 0x264   : > { %v985_v14 = vpop.permute.xlu0 %984 }
 0x265   : > { %v994_v15 = vand.u32 %v985_v14, %v3337_v13 }
 0x267   : > { %1002 = vmatpush.bf16.msra.mxu1 %v994_v15 }
 0x26c   : > { %v983_v17 = vpop.permute.xlu0 %982 }
 0x26d   : > { %1003 = vmatpush.bf16.msra.mxu1 %v983_v17 }
 0x274   : > { %v1187_v20 = vpop.permute.xlu0 %1186 }
 0x275   : > { %v1196_v22 = vand.u32 %v1187_v20, %v3337_v13 }
 0x277   : > { %1204 = vmatpush.bf16.msrb.mxu1 %v1196_v22 }
 0x27b   : > { %1205 = vmatpush.bf16.msrb.mxu1 %v1185_v23 }
 0x285   : > { %1083 = vrot.lane.b32.xlu1 %v878_v39, %s3057_s28 }
 0x297   : > { %v2799_v24 = vpop.trf.xlu1 }
 0x298   : > { %v2800_v25 = vunpack.i.l.bf16 %v2799_v24 }
 0x29a   : > { %v791_v30 = vpack.c.bf16 %v2800_v25, %v2800_v25 }
 0x29c   : > { %v806_v33 = vunpack.c.l.b16 %v791_v30 }
 0x29f   : > { %v2804_v28 = vpop.trf.xlu1 }
 0x2a0   : > { %v2805_v29 = vunpack.i.l.bf16 %v2804_v28  ;;  %v2808_v52 = vunpack.i.h.bf16 %v2804_v28 }
 0x2a2   : > { %v792_v31 = vpack.c.bf16 %v2805_v29, %v2805_v29  ;;  %v1307_v55 = vpack.c.bf16 %v2808_v52, %v2808_v52 }
 0x2a4   : > { %v807_v32 = vunpack.c.l.b16 %v792_v31  ;;  %v1336_v63 = vunpack.c.l.b16 %v1307_v55 }
 0x2a6   : > { %v808_v35 = vpack.c.b16 %v807_v32, %v806_v33 }
 0x2a7   : > { %v2809_v36 = vpop.trf.xlu1 }
 0x2a8   : > { %824 = vmatpush.bf16.msra.mxu3 %v808_v35  ;;  %v2810_v40 = vunpack.i.l.bf16 %v2809_v36 }
 0x2aa   : > { %v793_v45 = vpack.c.bf16 %v2810_v40, %v2810_v40 }
 0x2ab   : > { %2654 = vmatmul.msk.bf16.vlgmr.msra.gmra.mxu3 %vm810_vm9, %v3272_v8  ;;  %v2803_v8 = vunpack.i.h.bf16 %v2799_v24  ;;  %v2813_v24 = vunpack.i.h.bf16 %v2809_v36 }
 0x2ac   : > { %899 = vmatpush.bf16.msrb.mxu3 %v891_v37  ;;  %v919_v48 = vunpack.c.l.b16 %v793_v45 }
 0x2ad   : > { %v1306_v59 = vpack.c.bf16 %v2803_v8, %v2803_v8  ;;  %v1308_v33 = vpack.c.bf16 %v2813_v24, %v2813_v24 }
 0x2af   : > { %v2814_v42 = vpop.trf.xlu1  ;;  %v1335_v12 = vunpack.c.l.b16 %v1306_v59 }
 0x2b0   : > { %900 = vmatpush.bf16.msrb.mxu3 %v878_v39  ;;  %v2815_v44 = vunpack.i.l.bf16 %v2814_v42  ;;  %v2818_v22 = vunpack.i.h.bf16 %v2814_v42 }
 0x2b2   : > { %v794_v46 = vpack.c.bf16 %v2815_v44, %v2815_v44  ;;  %v1309_v28 = vpack.c.bf16 %v2818_v22, %v2818_v22 }
 0x2b4   : > { %1103 = vmatpush.bf16.msra.mxu3 %v1095_v27  ;;  %v920_v47 = vunpack.c.l.b16 %v794_v46  ;;  %v1453_v40 = vunpack.c.l.b16 %v1309_v28 }
 0x2b6   : > { %v921_v49 = vpack.c.b16 %v920_v47, %v919_v48 }
 0x2b7   : > { %v2819_v50 = vpop.trf.xlu1 }
 0x2b8   : > { %936 = vmatpush.bf16.msrb.mxu0 %v921_v49  ;;  %v2820_v38 = vunpack.i.l.bf16 %v2819_v50  ;;  %v2823_v53 = vunpack.i.h.bf16 %v2819_v50 }
 0x2ba   : > { %v795_v54 = vpack.c.bf16 %v2820_v38, %v2820_v38  ;;  %v1310_v60 = vpack.c.bf16 %v2823_v53, %v2823_v53 }
 0x2bb   : > { %2655 = vmatmul.msk.bf16.gmra.mxu3 %vm810_vm9, %v3266_v0  ;;  %2658 = vmatmul.msk.bf16.vlgmr.msrb.gmra.mxu0 %vm810_vm9, %v914_v41  ;;  %v1337_v41 = vpack.c.b16 %v1336_v63, %v1335_v12 }
 0x2bc   : > { %v1020_v62 = vunpack.c.l.b16 %v795_v54  ;;  %v1553_v14 = vunpack.c.l.b16 %v1310_v60 }
 0x2bf   : > { %v2824_v56 = vpop.trf.xlu1 }
 0x2c0   : > { %v2828_v57 = vunpack.i.h.bf16 %v2824_v56  ;;  %v2825_v58 = vunpack.i.l.bf16 %v2824_v56 }
 0x2c2   : > { %v1311_v39 = vpack.c.bf16 %v2828_v57, %v2828_v57  ;;  %v796_v61 = vpack.c.bf16 %v2825_v58, %v2825_v58 }
 0x2c4   : > { %v1021_v26 = vunpack.c.l.b16 %v796_v61  ;;  %v1554_v15 = vunpack.c.l.b16 %v1311_v39 }
 0x2c6   : > { %v1022_v0 = vpack.c.b16 %v1021_v26, %v1020_v62  ;;  %v1555_v20 = vpack.c.b16 %v1554_v15, %v1553_v14 }
 0x2c7   : > { %v2829_v17 = vpop.trf.xlu1 }
 0x2c8   : > { %1037 = vmatpush.bf16.msrb.mxu2 %v1022_v0  ;;  %v2830_v19 = vunpack.i.l.bf16 %v2829_v17  ;;  %v2833_v23 = vunpack.i.h.bf16 %v2829_v17 }
 0x2ca   : > { %v797_v25 = vpack.c.bf16 %v2830_v19, %v2830_v19  ;;  %v1312_v29 = vpack.c.bf16 %v2833_v23, %v2833_v23 }
 0x2cb   : > { %2659 = vmatmul.msk.bf16.gmra.mxu0 %vm810_vm9, %v3316_v1  ;;  %2662 = vmatmul.msk.bf16.vlgmr.msrb.gmra.mxu2 %vm810_vm9, %v3320_v3  ;;  %v1452_v1 = vunpack.c.l.b16 %v1308_v33 }
 0x2cc   : > { %1352 = vmatpush.bf16.msra.mxu2 %v1337_v41  ;;  %v1121_v35 = vunpack.c.l.b16 %v797_v25  ;;  %v1654_v42 = vunpack.c.l.b16 %v1312_v29 }
 0x2cd   : > { %v1454_v47 = vpack.c.b16 %v1453_v40, %v1452_v1 }
 0x2cf   : > { %v2834_v30 = vpop.trf.xlu1 }
 0x2d0   : > { %1570 = vmatpush.bf16.msrb.mxu2 %v1555_v20  ;;  %v2838_v31 = vunpack.i.h.bf16 %v2834_v30  ;;  %v2835_v32 = vunpack.i.l.bf16 %v2834_v30 }
 0x2d2   : > { %v1313_v37 = vpack.c.bf16 %v2838_v31, %v2838_v31  ;;  %v798_v27 = vpack.c.bf16 %v2835_v32, %v2835_v32 }
 0x2d4   : > { %v1655_v44 = vunpack.c.l.b16 %v1313_v37  ;;  %v1122_v45 = vunpack.c.l.b16 %v798_v27 }
 0x2d6   : > { %v1123_v46 = vpack.c.b16 %v1122_v45, %v1121_v35  ;;  %v1656_v3 = vpack.c.b16 %v1655_v44, %v1654_v42 }
 0x2d8   : > { %1138 = vmatpush.bf16.msra.mxu0 %v1123_v46 }
 0x2db   : > { %2663 = vmatmul.msk.bf16.gmra.mxu2 %vm810_vm9, %v3324_v5  ;;  %2666 = vmatmul.msk.bf16.vlgmr.msra.gmra.mxu0 %vm810_vm9, %v3318_v2 }
 0x2dc   : > { %1469 = vmatpush.bf16.msrb.mxu0 %v1454_v47 }
 0x2e0   : > { %1671 = vmatpush.bf16.msra.mxu0 %v1656_v3 }
 0x2eb   : > { %2667 = vmatmul.msk.bf16.gmra.mxu0 %vm810_vm9, %v3322_v4  ;;  %2670 = vmatmul.msk.bf16.vlgmr.msra.gmra.mxu2 %vm810_vm9, %v3289_v34 }
 0x2f7   : > { %v1084_v36 = vpop.permute.xlu1 %1083 }
 0x2f8   : > { %1104 = vmatpush.bf16.msra.mxu3 %v1084_v36 }
 0x2fb   : > { %2671 = vmatmul.msk.bf16.gmra.mxu2 %vm810_vm9, %v3282_v18  ;;  %2674 = vmatmul.msk.bf16.vlgmr.msrb.gmra.mxu0 %vm810_vm9, %v3328_v7 }
 0x30b   : > { %2675 = vmatmul.msk.bf16.gmra.mxu0 %vm810_vm9, %v3326_v6  ;;  %2678 = vmatmul.msk.bf16.vlgmr.msrb.gmra.mxu2 %vm810_vm9, %v3332_v10 }
 0x31b   : > { %2679 = vmatmul.msk.bf16.gmra.mxu2 %vm810_vm9, %v3340_v16  ;;  %2682 = vmatmul.msk.bf16.vlgmr.msra.gmra.mxu0 %vm810_vm9, %v3330_v9 }
 0x32b   : > { %2683 = vmatmul.msk.bf16.gmra.mxu0 %vm810_vm9, %v3334_v11 }
 0x32e   : > { %v3377_v18 = vpop.f32.mrf.mxu3 }
 0x32f   : > { %v836_v34 = vsel %vm835_vm10, %v3377_v18, -inf }
 0x330   : > { %837 = vmax.xlane.f32.xlu2 %v836_v34 }
 0x336   : > { %v3381_v2 = vpop.f32.mrf.mxu3 }
 0x337   : > { %v839_v4 = vsel %vm835_vm10, %v3381_v2, -inf }
 0x338   : > { %v3385_v5 = vpop.f32.mrf.mxu0  ;;  %840 = vmax.xlane.f32.xlu0 %v839_v4 }
 0x339   : > { %v947_v6 = vsel %vm835_vm10, %v3385_v5, -inf }
 0x33a   : > { %948 = vmax.xlane.f32.xlu1 %v947_v6 }
 0x33e   : > { %v3389_v7 = vpop.f32.mrf.mxu3 }
 0x33f   : > { %v843_v9 = vsel %vm842_vm11, %v3389_v7, -inf }
 0x340   : > { %v3393_v10 = vpop.f32.mrf.mxu0  ;;  %844 = vmax.xlane.f32.xlu0 %v843_v9 }
 0x341   : > { %v950_v11 = vsel %vm835_vm10, %v3393_v10, -inf }
 0x342   : > { %951 = vmax.xlane.f32.xlu2 %v950_v11 }
 0x346   : > { %v833_v16 = vpop.f32.mrf.mxu3 }
 0x348   : > { %v3397_v48 = vpop.f32.mrf.mxu0 }
 0x349   : > { %v953_v49 = vsel %vm842_vm11, %v3397_v48, -inf }
 0x34a   : > { %954 = vmax.xlane.f32.xlu2 %v953_v49 }
 0x34e   : > { %v3401_v50 = vpop.f32.mrf.mxu2 }
 0x34f   : > { %v1048_v38 = vsel %vm835_vm10, %v3401_v50, -inf }
 0x350   : > { %v945_v52 = vpop.f32.mrf.mxu0  ;;  %1049 = vmax.xlane.f32.xlu0 %v1048_v38 }
 0x356   : > { %v3405_v8 = vpop.f32.mrf.mxu2 }
 0x357   : > { %v1051_v53 = vsel %vm835_vm10, %v3405_v8, -inf }
 0x358   : > { %v3409_v54 = vpop.f32.mrf.mxu0  ;;  %1052 = vmax.xlane.f32.xlu2 %v1051_v53 }
 0x359   : > { %v1149_v55 = vsel %vm835_vm10, %v3409_v54, -inf }
 0x35a   : > { %1150 = vmax.xlane.f32.xlu0 %v1149_v55 }
 0x35e   : > { %v3413_v56 = vpop.f32.mrf.mxu2 }
 0x35f   : > { %v1054_v59 = vsel %vm842_vm11, %v3413_v56, -inf }
 0x360   : > { %v3415_v57 = vpop.f32.mrf.mxu0 }
 0x361   : > { %v1152_v58 = vsel %vm835_vm10, %v3415_v57, -inf }
 0x362   : > { %1153 = vmax.xlane.f32.xlu2 %v1152_v58  ;;  %1055 = vmax.xlane.f32.xlu0 %v1054_v59 }
 0x366   : > { %v1046_v60 = vpop.f32.mrf.mxu2 }
 0x368   : > { %v3421_v39 = vpop.f32.mrf.mxu0 }
 0x369   : > { %v1155_v61 = vsel %vm842_vm11, %v3421_v39, -inf }
 0x36a   : > { %1156 = vmax.xlane.f32.xlu2 %v1155_v61 }
 0x36e   : > { %v3425_v62 = vpop.f32.mrf.mxu2 }
 0x36f   : > { %v1363_v26 = vsel %vm835_vm10, %v3425_v62, -inf }
 0x370   : > { %v1147_v63 = vpop.f32.mrf.mxu0 }
 0x372   : > { %1364 = vmax.xlane.f32.xlu2 %v1363_v26 }
 0x376   : > { %v3429_v12 = vpop.f32.mrf.mxu2 }
 0x377   : > { %v1366_v15 = vsel %vm835_vm10, %v3429_v12, -inf }
 0x378   : > { %v3431_v14 = vpop.f32.mrf.mxu0 }
 0x379   : > { %v1480_v41 = vsel %vm835_vm10, %v3431_v14, -inf }
 0x37a   : > { %1367 = vmax.xlane.f32.xlu2 %v1366_v15 }
 0x37e   : > { %v3435_v0 = vpop.f32.mrf.mxu2 }
 0x37f   : > { %v1369_v24 = vsel %vm842_vm11, %v3435_v0, -inf }
 0x380   : > { %v3437_v17 = vpop.f32.mrf.mxu0 }
 0x381   : > { %v1483_v19 = vsel %vm835_vm10, %v3437_v17, -inf }
 0x382   : > { %1481 = vmax.xlane.f32.xlu2 %v1480_v41  ;;  %1484 = vmax.xlane.f32.xlu0 %v1483_v19 }
 0x386   : > { %v1361_v20 = vpop.f32.mrf.mxu2 }
 0x388   : > { %v3443_v22 = vpop.f32.mrf.mxu0 }
 0x389   : > { %v1486_v23 = vsel %vm842_vm11, %v3443_v22, -inf }
 0x38a   : > { %1487 = vmax.xlane.f32.xlu1 %v1486_v23  ;;  %1370 = vmax.xlane.f32.xlu2 %v1369_v24 }
 0x38e   : > { %v3449_v25 = vpop.f32.mrf.mxu2 }
 0x38f   : > { %v1581_v29 = vsel %vm835_vm10, %v3449_v25, -inf }
 0x390   : > { %v1478_v28 = vpop.f32.mrf.mxu0 }
 0x391   : > { %v3505_v28 = vshrl.u32 %v3295_v43, 16 }
 0x392   : > { %1582 = vmax.xlane.f32.xlu2 %v1581_v29 }
 0x396   : > { %v3453_v30 = vpop.f32.mrf.mxu2 }
 0x397   : > { %v1584_v31 = vsel %vm835_vm10, %v3453_v30, -inf }
 0x398   : > { %v3457_v32 = vpop.f32.mrf.mxu0  ;;  %1585 = vmax.xlane.f32.xlu0 %v1584_v31 }
 0x399   : > { %v1682_v35 = vsel %vm835_vm10, %v3457_v32, -inf }
 0x39e   : > { %v3459_v33 = vpop.f32.mrf.mxu2 }
 0x3a0   : > { %v3463_v37 = vpop.f32.mrf.mxu0  ;;  %1683 = vmax.xlane.f32.xlu0 %v1682_v35 }
 0x3a1   : > { %v1685_v27 = vsel %vm835_vm10, %v3463_v37, -inf }
 0x3a2   : > { %1686 = vmax.xlane.f32.xlu1 %v1685_v27 }
 0x3a3   : > { %v838_v40 = vpop.xlane.xlu2 %837 }
 0x3a4   : > { %v846_v42 = vsub.f32 %v3377_v18, %v838_v40 }
 0x3a6   : > { %v849_v44 = vmul.f32 1.442695, %v846_v42  ;;  %v1579_v45 = vpop.f32.mrf.mxu2 }
 0x3a8   : > { %2882 = vpow2.f32 %v849_v44  ;;  %v3468_v1 = vpop.f32.mrf.mxu0 }
 0x3ab   : > { %v841_v46 = vpop.xlane.xlu0 %840 }
 0x3ac   : > { %v847_v47 = vsub.f32 %v3381_v2, %v841_v46 }
 0x3ad   : > { %v949_v3 = vpop.xlane.xlu1 %948 }
 0x3ae   : > { %v3471_v36 = vpop.eup %2882  ;;  %v851_v34 = vmul.f32 1.442695, %v847_v47  ;;  %v956_v4 = vsub.f32 %v3385_v5, %v949_v3  ;;  %v1688_v5 = vsel %vm842_vm11, %v3468_v1, -inf }
 0x3af   : > { %v855_v6 = vsel %vm835_vm10, %v3471_v36, 0.0 }
 0x3b0   : > { %2884 = vpow2.f32 %v851_v34  ;;  %v1680_v9 = vpop.f32.mrf.mxu0  ;;  %856 = vadd.xlane.f32.xlu2 %v855_v6  ;;  %v959_v18 = vmul.f32 1.442695, %v956_v4 }
 0x3b2   : > { %2886 = vpow2.f32 %v959_v18 }
 0x3b3   : > { %v845_v11 = vpop.xlane.xlu0 %844 }
 0x3b4   : > { %v848_v16 = vsub.f32 %v3389_v7, %v845_v11 }
 0x3b5   : > { %v952_v49 = vpop.xlane.xlu2 %951 }
 0x3b6   : > { %v3477_v38 = vpop.eup %2884  ;;  %v853_v2 = vmul.f32 1.442695, %v848_v16  ;;  %v957_v52 = vsub.f32 %v3393_v10, %v952_v49 }
 0x3b7   : > { %v858_v53 = vsel %vm835_vm10, %v3477_v38, 0.0 }
 0x3b8   : > { %2888 = vpow2.f32 %v853_v2  ;;  %1689 = vmax.xlane.f32.xlu2 %v1688_v5  ;;  %859 = vadd.xlane.f32.xlu0 %v858_v53  ;;  %v961_v55 = vmul.f32 1.442695, %v957_v52  ;;  %v3486_v7 = vpop.eup %2886 }
 0x3b9   : > { %v965_v60 = vsel %vm835_vm10, %v3486_v7, 0.0 }
 0x3ba   : > { %2890 = vpow2.f32 %v961_v55  ;;  %v1587_v55 = vsel %vm842_vm11, %v3459_v33, -inf }
 0x3bb   : > { %1515 = vrot.lane.b32.xlu1 %v3303_v51, %s3055_s22 }
 0x3bd   : > { %v955_v58 = vpop.xlane.xlu2 %954 }
 0x3be   : > { %v3488_v59 = vpop.eup %2888  ;;  %v958_v10 = vsub.f32 %v3397_v48, %v955_v58 }
 0x3bf   : > { %v861_v61 = vsel %vm842_vm11, %v3488_v59, 0.0 }
 0x3c0   : > { %966 = vadd.xlane.f32.xlu0 %v965_v60  ;;  %862 = vadd.xlane.f32.xlu2 %v861_v61  ;;  %v963_v63 = vmul.f32 1.442695, %v958_v10  ;;  %v3495_v15 = vpop.eup %2890 }
 0x3c1   : > { %v968_v19 = vsel %vm835_vm10, %v3495_v15, 0.0 }
 0x3c2   : > { %2892 = vpow2.f32 %v963_v63 }
 0x3c3   : > { %v1050_v26 = vpop.xlane.xlu0 %1049 }
 0x3c4   : > { %v1057_v41 = vsub.f32 %v3401_v50, %v1050_v26 }
 0x3c6   : > { %v1060_v48 = vmul.f32 1.442695, %v1057_v41 }
 0x3c8   : > { %969 = vadd.xlane.f32.xlu2 %v968_v19  ;;  %v3500_v20 = vpop.eup %2892  ;;  %2894 = vpow2.f32 %v1060_v48 }
 0x3c9   : > { %v971_v24 = vsel %vm842_vm11, %v3500_v20, 0.0 }
 0x3cb   : > { %v1053_v23 = vpop.xlane.xlu2 %1052 }
 0x3cc   : > { %v1058_v29 = vsub.f32 %v3405_v8, %v1053_v23 }
 0x3cd   : > { %v1151_v35 = vpop.xlane.xlu0 %1150 }
 0x3ce   : > { %v3508_v31 = vpop.eup %2894  ;;  %v1062_v27 = vmul.f32 1.442695, %v1058_v29  ;;  %v1158_v42 = vsub.f32 %v3409_v54, %v1151_v35 }
 0x3cf   : > { %v1066_v40 = vsel %vm835_vm10, %v3508_v31, 0.0 }
 0x3d0   : > { %972 = vadd.xlane.f32.xlu2 %v971_v24  ;;  %2896 = vpow2.f32 %v1062_v27  ;;  %v1161_v43 = vmul.f32 1.442695, %v1158_v42 }
 0x3d2   : > { %2898 = vpow2.f32 %v1161_v43 }
 0x3d4   : > { %1517 = vrot.lane.b32.xlu0 %v3505_v28, %s3055_s22 }
 0x3d5   : > { %v1154_v50 = vpop.xlane.xlu2 %1153  ;;  %v1056_v45 = vpop.xlane.xlu0 %1055 }
 0x3d6   : > { %v3515_v46 = vpop.eup %2896  ;;  %v1059_v8 = vsub.f32 %v3413_v56, %v1056_v45  ;;  %v1159_v11 = vsub.f32 %v3415_v57, %v1154_v50 }
 0x3d7   : > { %v1069_v47 = vsel %vm835_vm10, %v3515_v46, 0.0 }
 0x3d8   : > { %1067 = vadd.xlane.f32.xlu2 %v1066_v40  ;;  %v1064_v34 = vmul.f32 1.442695, %v1059_v8  ;;  %v3520_v4 = vpop.eup %2898  ;;  %v1163_v2 = vmul.f32 1.442695, %v1159_v11 }
 0x3d9   : > { %v1167_v54 = vsel %vm835_vm10, %v3520_v4, 0.0 }
 0x3da   : > { %2900 = vpow2.f32 %v1064_v34 }
 0x3dd   : > { %v1157_v44 = vpop.xlane.xlu2 %1156 }
 0x3e0   : > { %v3527_v56 = vpop.eup %2900 }
 0x3e1   : > { %v1072_v16 = vsel %vm842_vm11, %v3527_v56, 0.0 }
 0x3e5   : > { %1070 = vadd.xlane.f32.xlu1 %v1069_v47  ;;  %v1365_v3 = vpop.xlane.xlu2 %1364 }
 0x3e6   : > { %v1372_v48 = vsub.f32 %v3425_v62, %v1365_v3 }
 0x3ed   : > { %v1368_v6 = vpop.xlane.xlu2 %1367  ;;  %1168 = vadd.xlane.f32.xlu1 %v1167_v54 }
 0x3ee   : > { %v1373_v9 = vsub.f32 %v3429_v12, %v1368_v6  ;;  %v1160_v12 = vsub.f32 %v3421_v39, %v1157_v44 }
 0x3f0   : > { %v1377_v18 = vmul.f32 1.442695, %v1373_v9  ;;  %1618 = vrot.lane.b32.xlu2 %v3505_v28, %s3057_s28  ;;  %v1165_v10 = vmul.f32 1.442695, %v1160_v12 }
 0x3f2   : > { %2902 = vpow2.f32 %v1377_v18 }
 0x3f3   : > { %2904 = vpow2.f32 %v1163_v2 }
 0x3f5   : > { %v1482_v49 = vpop.xlane.xlu2 %1481  ;;  %1073 = vadd.xlane.f32.xlu1 %v1072_v16  ;;  %v1485_v57 = vpop.xlane.xlu0 %1484 }
 0x3f6   : > { %v1490_v61 = vsub.f32 %v3437_v17, %v1485_v57  ;;  %v1489_v39 = vsub.f32 %v3431_v14, %v1482_v49  ;;  %v1375_v14 = vmul.f32 1.442695, %v1372_v48  ;;  %v1426_v48 = vand.u32 %v3505_v28, %v3337_v13 }
 0x3f8   : > { %v3532_v52 = vpop.eup %2902  ;;  %v1494_v26 = vmul.f32 1.442695, %v1490_v61 }
 0x3f9   : > { %v1384_v5 = vsel %vm835_vm10, %v3532_v52, 0.0  ;;  %v3541_v63 = vpop.eup %2904 }
 0x3fa   : > { %v1170_v41 = vsel %vm835_vm10, %v3541_v63, 0.0 }
 0x3fd   : > { %v1371_v53 = vpop.xlane.xlu2 %1370  ;;  %1385 = vadd.xlane.f32.xlu1 %v1384_v5  ;;  %v1488_v35 = vpop.xlane.xlu1 %1487 }
 0x3fe   : > { %v1374_v58 = vsub.f32 %v3435_v0, %v1371_v53  ;;  %1588 = vmax.xlane.f32.xlu0 %v1587_v55  ;;  %v1492_v0 = vmul.f32 1.442695, %v1489_v39 }
 0x400   : > { %v1379_v60 = vmul.f32 1.442695, %v1374_v58 }
 0x402   : > { %2906 = vpow2.f32 %v1379_v60 }
 0x403   : > { %2908 = vpow2.f32 %v1165_v10 }
 0x404   : > { %2910 = vpow2.f32 %v1494_v26 }
 0x405   : > { %v1583_v19 = vpop.xlane.xlu2 %1582  ;;  %2912 = vpow2.f32 %v1492_v0 }
 0x406   : > { %1171 = vadd.xlane.f32.xlu0 %v1170_v41  ;;  %v1590_v17 = vsub.f32 %v3449_v25, %v1583_v19  ;;  %2914 = vpow2.f32 %v1375_v14  ;;  %v1491_v25 = vsub.f32 %v3443_v22, %v1488_v35 }
 0x408   : > { %v3547_v23 = vpop.eup %2906  ;;  %v1593_v27 = vmul.f32 1.442695, %v1590_v17  ;;  %v1496_v43 = vmul.f32 1.442695, %v1491_v25 }
 0x409   : > { %v3550_v24 = vpop.eup %2908  ;;  %v1387_v29 = vsel %vm842_vm11, %v3547_v23, 0.0 }
 0x40a   : > { %1388 = vadd.xlane.f32.xlu1 %v1387_v29  ;;  %v1173_v62 = vsel %vm842_vm11, %v3550_v24, 0.0  ;;  %v3556_v40 = vpop.eup %2910  ;;  %2916 = vpow2.f32 %v1593_v27 }
 0x40b   : > { %v1586_v50 = vpop.xlane.xlu0 %1585  ;;  %v3559_v42 = vpop.eup %2912  ;;  %v1501_v44 = vsel %vm835_vm10, %v3556_v40, 0.0  ;;  %2918 = vpow2.f32 %v1496_v43 }
 0x40c   : > { %v3564_v47 = vpop.eup %2914  ;;  %v1498_v34 = vsel %vm835_vm10, %v3559_v42, 0.0  ;;  %v1591_v9 = vsub.f32 %v3453_v30, %v1586_v50 }
 0x40d   : > { %v1381_v18 = vsel %vm835_vm10, %v3564_v47, 0.0 }
 0x40e   : > { %1174 = vadd.xlane.f32.xlu0 %v1173_v62  ;;  %v1595_v16 = vmul.f32 1.442695, %v1591_v9 }
 0x410   : > { %v3569_v6 = vpop.eup %2916 }
 0x411   : > { %v1599_v11 = vsel %vm835_vm10, %v3569_v6, 0.0  ;;  %v3576_v49 = vpop.eup %2918 }
 0x412   : > { %1502 = vadd.xlane.f32.xlu1 %v1501_v44  ;;  %v1504_v2 = vsel %vm842_vm11, %v3576_v49, 0.0 }
 0x413   : > { %v1684_v45 = vpop.xlane.xlu0 %1683 }
 0x414   : > { %v1691_v8 = vsub.f32 %v3457_v32, %v1684_v45 }
 0x415   : > { %v1687_v3 = vpop.xlane.xlu1 %1686 }
 0x416   : > { %v1694_v54 = vmul.f32 1.442695, %v1691_v8  ;;  %v1692_v22 = vsub.f32 %v3463_v37, %v1687_v3  ;;  %1499 = vadd.xlane.f32.xlu0 %v1498_v34 }
 0x418   : > { %2920 = vpow2.f32 %v1694_v54  ;;  %v1696_v32 = vmul.f32 1.442695, %v1692_v22 }
 0x419   : > { %1382 = vadd.xlane.f32.xlu2 %v1381_v18 }
 0x41a   : > { %1600 = vadd.xlane.f32.xlu1 %v1599_v11  ;;  %2922 = vpow2.f32 %v1696_v32 }
 0x41b   : > { %2924 = vpow2.f32 %v1595_v16 }
 0x41e   : > { %v3578_v37 = vpop.eup %2920 }
 0x41f   : > { %v1700_v30 = vsel %vm835_vm10, %v3578_v37, 0.0 }
 0x420   : > { %1701 = vadd.xlane.f32.xlu0 %v1700_v30  ;;  %v3584_v5 = vpop.eup %2922 }
 0x421   : > { %1505 = vadd.xlane.f32.xlu2 %v1504_v2  ;;  %v3586_v53 = vpop.eup %2924  ;;  %v1703_v55 = vsel %vm835_vm10, %v3584_v5, 0.0 }
 0x422   : > { %v1602_v57 = vsel %vm835_vm10, %v3586_v53, 0.0 }
 0x423   : > { %v857_v12 = vpop.xlane.xlu2 %856 }
 0x424   : > { %2926 = vrcp.f32 %v857_v12 }
 0x428   : > { %1704 = vadd.xlane.f32.xlu0 %v1703_v55 }
 0x429   : > { %1603 = vadd.xlane.f32.xlu2 %v1602_v57 }
 0x42a   : > { %v2927_v60 = vpop.eup %2926 }
 0x42b   : > { %v1690_v58 = vpop.xlane.xlu2 %1689  ;;  %v860_v10 = vpop.xlane.xlu0 %859  ;;  %v867_v39 = vmul.f32 %v2927_v60, %v3471_v36 }
 0x42c   : > { %2928 = vrcp.f32 %v860_v10 }
 0x432   : > { %v2929_v61 = vpop.eup %2928 }
 0x433   : > { %v868_v26 = vmul.f32 %v2929_v61, %v3477_v38  ;;  %v863_v41 = vpop.xlane.xlu2 %862  ;;  %1717 = vrot.lane.b32.xlu1 %v3303_v51, %s3056_s25  ;;  %v967_v0 = vpop.xlane.xlu0 %966 }
 0x434   : > { %2930 = vrcp.f32 %v863_v41 }
 0x435   : > { %v870_v19 = vpack.c.bf16 %v868_v26, %v867_v39  ;;  %2932 = vrcp.f32 %v967_v0 }
 0x437   : > { %2656 = vmatmul.msk.bf16.vlgmr.msrb.gmra.mxu3 %vm835_vm10, %v870_v19 }
 0x438   : > { %1434 = vmatpush.bf16.msrb.mxu3 %v1426_v48 }
 0x43a   : > { %v2931_v36 = vpop.eup %2930 }
 0x43b   : > { %v970_v17 = vpop.xlane.xlu2 %969  ;;  %v2933_v38 = vpop.eup %2932  ;;  %v869_v29 = vmul.f32 %v2931_v36, %v3488_v59 }
 0x43c   : > { %2934 = vrcp.f32 %v970_v17  ;;  %1435 = vmatpush.bf16.msrb.mxu3 %v3303_v51  ;;  %1719 = vrot.lane.b32.xlu0 %v3505_v28, %s3056_s25  ;;  %v977_v50 = vmul.f32 %v2933_v38, %v3486_v7  ;;  %v1693_v7 = vsub.f32 %v3468_v1, %v1690_v58 }
 0x43d   : > { %v871_v25 = vpack.c.bf16 %v869_v29, %v869_v29 }
 0x43e   : > { %v1698_v8 = vmul.f32 1.442695, %v1693_v7 }
 0x441   : > { %1616 = vrot.lane.b32.xlu2 %v3303_v51, %s3057_s28  ;;  %v1516_v51 = vpop.permute.xlu1 %1515 }
 0x442   : > { %v2935_v14 = vpop.eup %2934 }
 0x443   : > { %v978_v35 = vmul.f32 %v2935_v14, %v3495_v15  ;;  %v973_v62 = vpop.xlane.xlu2 %972 }
 0x444   : > { %2936 = vrcp.f32 %v973_v62 }
 0x445   : > { %v980_v27 = vpack.c.bf16 %v978_v35, %v977_v50 }
 0x446   : > { %v1518_v44 = vpop.permute.xlu0 %1517 }
 0x447   : > { %v1527_v43 = vand.u32 %v1518_v44, %v3337_v13  ;;  %2657 = vmatmul.msk.bf16.gmra.mxu3 %vm835_vm10, %v871_v25  ;;  %2660 = vmatmul.msk.bf16.vlgmr.msra.gmra.mxu1 %vm835_vm10, %v980_v27 }
 0x449   : > { %1535 = vmatpush.bf16.msra.mxu1 %v1527_v43 }
 0x44a   : > { %v2937_v59 = vpop.eup %2936 }
 0x44b   : > { %v979_v28 = vmul.f32 %v2937_v59, %v3500_v20  ;;  %v1068_v15 = vpop.xlane.xlu2 %1067 }
 0x44c   : > { %2938 = vrcp.f32 %v1068_v15 }
 0x44d   : > { %1536 = vmatpush.bf16.msra.mxu1 %v1516_v51  ;;  %v981_v45 = vpack.c.bf16 %v979_v28, %v979_v28 }
 0x452   : > { %v2939_v34 = vpop.eup %2938 }
 0x453   : > { %v1078_v22 = vmul.f32 %v2939_v34, %v3508_v31  ;;  %v1619_v9 = vpop.permute.xlu2 %1618 }
 0x454   : > { %v1628_v11 = vand.u32 %v1619_v9, %v3337_v13 }
 0x457   : > { %2661 = vmatmul.msk.bf16.gmra.mxu1 %vm835_vm10, %v981_v45 }
 0x458   : > { %v1071_v3 = vpop.xlane.xlu1 %1070 }
 0x459   : > { %2940 = vrcp.f32 %v1071_v3 }
 0x45a   : > { %2942 = vpow2.f32 %v1698_v8 }
 0x45f   : > { %v2941_v54 = vpop.eup %2940 }
 0x460   : > { %v1079_v18 = vmul.f32 %v2941_v54, %v3515_v46  ;;  %v1169_v32 = vpop.xlane.xlu1 %1168  ;;  %v3615_v20 = vpop.eup %2942 }
 0x461   : > { %v1706_v16 = vsel %vm842_vm11, %v3615_v20, 0.0 }
 0x462   : > { %v1081_v1 = vpack.c.bf16 %v1079_v18, %v1078_v22 }
 0x464   : > { %2664 = vmatmul.msk.bf16.vlgmr.msra.gmra.mxu3 %vm835_vm10, %v1081_v1 }
 0x465   : > { %1636 = vmatpush.bf16.msra.mxu3 %v1628_v11 }
 0x466   : > { %1707 = vadd.xlane.f32.xlu0 %v1706_v16 }
 0x468   : > { %v1074_v30 = vpop.xlane.xlu1 %1073 }
 0x469   : > { %2944 = vrcp.f32 %v1074_v30 }
 0x46f   : > { %v2945_v2 = vpop.eup %2944 }
 0x470   : > { %v1080_v31 = vmul.f32 %v2945_v2, %v3527_v56  ;;  %v1386_v26 = vpop.xlane.xlu1 %1385 }
 0x471   : > { %v1589_v12 = vpop.xlane.xlu0 %1588 }
 0x472   : > { %v1592_v46 = vsub.f32 %v3459_v33, %v1589_v12  ;;  %v1082_v55 = vpack.c.bf16 %v1080_v31, %v1080_v31 }
 0x474   : > { %v1597_v57 = vmul.f32 1.442695, %v1592_v46  ;;  %2665 = vmatmul.msk.bf16.gmra.mxu3 %vm835_vm10, %v1082_v55 }
 0x476   : > { %2946 = vpow2.f32 %v1597_v57 }
 0x477   : > { %2948 = vrcp.f32 %v1169_v32 }
 0x479   : > { %v1172_v58 = vpop.xlane.xlu0 %1171 }
 0x47a   : > { %2950 = vrcp.f32 %v1172_v58 }
 0x47c   : > { %v3624_v10 = vpop.eup %2946 }
 0x47d   : > { %v1605_v60 = vsel %vm842_vm11, %v3624_v10, 0.0  ;;  %v2949_v61 = vpop.eup %2948  ;;  %v1389_v48 = vpop.xlane.xlu1 %1388 }
 0x47e   : > { %1606 = vadd.xlane.f32.xlu2 %v1605_v60  ;;  %v1179_v56 = vmul.f32 %v2949_v61, %v3520_v4 }
 0x480   : > { %v2951_v39 = vpop.eup %2950 }
 0x481   : > { %v1180_v33 = vmul.f32 %v2951_v39, %v3541_v63  ;;  %v1175_v19 = vpop.xlane.xlu0 %1174 }
 0x482   : > { %2952 = vrcp.f32 %v1175_v19 }
 0x483   : > { %v1182_v41 = vpack.c.bf16 %v1180_v33, %v1179_v56  ;;  %2954 = vrcp.f32 %v1386_v26 }
 0x485   : > { %2668 = vmatmul.msk.bf16.vlgmr.msrb.gmra.mxu1 %vm835_vm10, %v1182_v41  ;;  %v1503_v27 = vpop.xlane.xlu1 %1502 }
 0x488   : > { %v2953_v0 = vpop.eup %2952 }
 0x489   : > { %v1181_v36 = vmul.f32 %v2953_v0, %v3550_v24  ;;  %v2955_v38 = vpop.eup %2954  ;;  %v1500_v14 = vpop.xlane.xlu0 %1499 }
 0x48a   : > { %v1394_v4 = vmul.f32 %v2955_v38, %v3532_v52 }
 0x48b   : > { %v1183_v50 = vpack.c.bf16 %v1181_v36, %v1181_v36 }
 0x48c   : > { %v1383_v17 = vpop.xlane.xlu2 %1382 }
 0x48d   : > { %2956 = vrcp.f32 %v1383_v17  ;;  %v1601_v8 = vpop.xlane.xlu1 %1600 }
 0x48e   : > { %2958 = vrcp.f32 %v1500_v14 }
 0x48f   : > { %2960 = vrcp.f32 %v1503_v27 }
 0x490   : > { %2962 = vrcp.f32 %v1389_v48 }
 0x493   : > { %v2957_v29 = vpop.eup %2956  ;;  %v1702_v24 = vpop.xlane.xlu0 %1701 }
 0x494   : > { %v1393_v63 = vmul.f32 %v2957_v29, %v3564_v47  ;;  %v1506_v35 = vpop.xlane.xlu2 %1505  ;;  %v2959_v25 = vpop.eup %2958 }
 0x495   : > { %2669 = vmatmul.msk.bf16.gmra.mxu1 %vm835_vm10, %v1183_v50  ;;  %v2961_v43 = vpop.eup %2960  ;;  %v1510_v59 = vmul.f32 %v2959_v25, %v3559_v42  ;;  %2964 = vrcp.f32 %v1506_v35 }
 0x496   : > { %v1396_v62 = vpack.c.bf16 %v1394_v4, %v1393_v63  ;;  %v2963_v51 = vpop.eup %2962  ;;  %v1511_v52 = vmul.f32 %v2961_v43, %v3556_v40 }
 0x497   : > { %v1395_v47 = vmul.f32 %v2963_v51, %v3547_v23 }
 0x498   : > { %2672 = vmatmul.msk.bf16.vlgmr.msrb.gmra.mxu3 %vm835_vm10, %v1396_v62  ;;  %v1513_v28 = vpack.c.bf16 %v1511_v52, %v1510_v59 }
 0x499   : > { %v1397_v45 = vpack.c.bf16 %v1395_v47, %v1395_v47  ;;  %v2760_v47 = vld [vmem:[%s3157_s14 + $0x18] sm:$0xff] }
 0x49a   : > { %1847 = vmatpush.bf16.msra.mxu2 %v2760_v47 }
 0x49b   : > { %v1705_v15 = vpop.xlane.xlu0 %1704  ;;  %v2965_v3 = vpop.eup %2964 }
 0x49c   : > { %v1604_v44 = vpop.xlane.xlu2 %1603  ;;  %v1512_v23 = vmul.f32 %v2965_v3, %v3576_v49 }
 0x49d   : > { %2966 = vrcp.f32 %v1604_v44 }
 0x49e   : > { %2968 = vrcp.f32 %v1601_v8  ;;  %v1514_v9 = vpack.c.bf16 %v1512_v23, %v1512_v23 }
 0x49f   : > { %2970 = vrcp.f32 %v1705_v15  ;;  %v2758_v15 = vld [vmem:[%s3157_s14 + $0x8] sm:$0xff] }
 0x4a0   : > { %2972 = vrcp.f32 %v1702_v24 }
 0x4a3   : > { %v2967_v42 = vpop.eup %2966 }
 0x4a4   : > { %v1617_v7 = vpop.permute.xlu2 %1616  ;;  %v2969_v54 = vpop.eup %2968  ;;  %v1612_v22 = vmul.f32 %v2967_v42, %v3586_v53 }
 0x4a5   : > { %2676 = vmatmul.msk.bf16.vlgmr.msra.gmra.mxu1 %vm835_vm10, %v1513_v28  ;;  %1637 = vmatpush.bf16.msra.mxu3 %v1617_v7  ;;  %v1611_v18 = vmul.f32 %v2969_v54, %v3569_v6  ;;  %v1718_v32 = vpop.permute.xlu1 %1717  ;;  %v2759_v7 = vld [vmem:[%s3157_s14 + $0x10] sm:$0xff] }
 0x4a6   : > { %1848 = vmatpush.bf16.msra.mxu2 %v2759_v7 }
 0x4a7   : > { %v1614_v1 = vpack.c.bf16 %v1612_v22, %v1611_v18 }
 0x4a8   : > { %2673 = vmatmul.msk.bf16.gmra.mxu3 %vm835_vm10, %v1397_v45  ;;  %v2757_v45 = vld [vmem:[%s3157_s14] sm:$0xff] }
 0x4aa   : > { %1849 = vmatpush.bf16.msra.mxu2 %v2758_v15 }
 0x4ae   : > { %v1720_v34 = vpop.permute.xlu0 %1719  ;;  %1850 = vmatpush.bf16.msra.mxu2 %v2757_v45 }
 0x4af   : > { %v1729_v40 = vand.u32 %v1720_v34, %v3337_v13  ;;  %v2971_v13 = vpop.eup %2970 }
 0x4b0   : > { %v2973_v49 = vpop.eup %2972  ;;  %v1713_v16 = vmul.f32 %v2971_v13, %v3584_v5 }
 0x4b1   : > { %1737 = vmatpush.bf16.msrb.mxu1 %v1729_v40  ;;  %v1712_v53 = vmul.f32 %v2973_v49, %v3578_v37 }
 0x4b3   : > { %v1715_v6 = vpack.c.bf16 %v1713_v16, %v1712_v53 }
 0x4b5   : > { %2677 = vmatmul.msk.bf16.gmra.mxu1 %vm835_vm10, %v1514_v9 }
 0x4b6   : > { %1738 = vmatpush.bf16.msrb.mxu1 %v1718_v32 }
 0x4b8   : > { %2680 = vmatmul.msk.bf16.vlgmr.msra.gmra.mxu3 %vm835_vm10, %v1614_v1 }
 0x4ba   : > { %v3647_v11 = vpop.f32.mrf.mxu3 }
 0x4c2   : > { %v3651_v30 = vpop.f32.mrf.mxu3 }
 0x4c4   : > { %v1005_v2 = vpop.f32.mrf.mxu1 }
 0x4c5   : > { %2684 = vmatmul.msk.bf16.vlgmr.msrb.gmra.mxu1 %vm835_vm10, %v1715_v6 }
 0x4ca   : > { %v3654_v31 = vpop.f32.mrf.mxu3 }
 0x4cc   : > { %v1007_v12 = vpop.f32.mrf.mxu1 }
 0x4cd   : > { %v2839_v46 = vpack.i.bf16 %v1007_v12, %v1005_v2 }
 0x4cf   : > { %2840 = vrot.lane.b32.xlu1 %v2839_v46, %s3059_s26 }
 0x4d2   : > { %v909_v55 = vpop.f32.mrf.mxu3 }
 0x4d4   : > { %v1010_v57 = vpop.f32.mrf.mxu1 }
 0x4d7   : > { %1223 = vrot.lane.b32.xlu1 %v1010_v57, %s3059_s26 }
 0x4d9   : > { %v1708_v5 = vpop.xlane.xlu0 %1707 }
 0x4da   : > { %2974 = vrcp.f32 %v1708_v5 }
 0x4dc   : > { %v1012_v37 = vpop.f32.mrf.mxu1 }
 0x4e0   : > { %v2975_v58 = vpop.eup %2974 }
 0x4e1   : > { %v1714_v60 = vmul.f32 %v2975_v58, %v3615_v20 }
 0x4e3   : > { %v1716_v61 = vpack.c.bf16 %v1714_v60, %v1714_v60 }
 0x4e5   : > { %2685 = vmatmul.msk.bf16.gmra.mxu1 %vm835_vm10, %v1716_v61 }
 0x4e7   : > { %v1106_v39 = vpop.f32.mrf.mxu3 }
 0x4ef   : > { %v1108_v56 = vpop.f32.mrf.mxu3 }
 0x4f0   : > { %v2844_v33 = vpack.i.bf16 %v1108_v56, %v1106_v39 }
 0x4f1   : > { %v1607_v26 = vpop.xlane.xlu2 %1606 }
 0x4f2   : > { %2976 = vrcp.f32 %v1607_v26  ;;  %2845 = vrot.lane.b32.xlu1 %v2844_v33, %s3060_s27 }
 0x4f7   : > { %v1111_v41 = vpop.f32.mrf.mxu3 }
 0x4f8   : > { %v2977_v19 = vpop.eup %2976 }
 0x4f9   : > { %v1613_v48 = vmul.f32 %v2977_v19, %v3624_v10 }
 0x4fb   : > { %v1615_v0 = vpack.c.bf16 %v1613_v48, %v1613_v48 }
 0x4fd   : > { %2681 = vmatmul.msk.bf16.gmra.mxu3 %vm835_vm10, %v1615_v0 }
 0x4ff   : > { %v1113_v17 = vpop.f32.mrf.mxu3 }
 0x502   : > { %v1207_v20 = vpop.f32.mrf.mxu1 }
 0x50a   : > { %v1209_v36 = vpop.f32.mrf.mxu1 }
 0x50b   : > { %v2849_v38 = vpack.i.bf16 %v1209_v36, %v1207_v20 }
 0x50d   : > { %2850 = vrot.lane.b32.xlu1 %v2849_v38, %s3061_s13 }
 0x512   : > { %v1212_v29 = vpop.f32.mrf.mxu1 }
 0x51a   : > { %v1214_v14 = vpop.f32.mrf.mxu1 }
 0x51b   : > { %v3664_v50 = vpop.f32.mrf.mxu3 }
 0x522   : > { %v1538_v4 = vpop.f32.mrf.mxu1 }
 0x523   : > { %v3666_v63 = vpop.f32.mrf.mxu3 }
 0x52a   : > { %v1540_v35 = vpop.f32.mrf.mxu1 }
 0x52b   : > { %v2854_v10 = vpack.i.bf16 %v1540_v35, %v1538_v4  ;;  %v3668_v27 = vpop.f32.mrf.mxu3 }
 0x52d   : > { %2855 = vrot.lane.b32.xlu2 %v2854_v10, %s3059_s26 }
 0x532   : > { %v1543_v62 = vpop.f32.mrf.mxu1 }
 0x533   : > { %v1444_v25 = vpop.f32.mrf.mxu3 }
 0x535   : > { %1247 = vrot.lane.b32.xlu2 %v1212_v29, %s3061_s13 }
 0x53a   : > { %v1545_v24 = vpop.f32.mrf.mxu1 }
 0x53b   : > { %v1639_v44 = vpop.f32.mrf.mxu3 }
 0x541   : > { %v2841_v3 = vpop.permute.xlu1 %2840 }
 0x542   : > { %v1740_v43 = vpop.f32.mrf.mxu1  ;;  %v2843_v23 = vunpack.i.h.bf16 %v2841_v3  ;;  %v2842_v54 = vunpack.i.l.bf16 %v2841_v3 }
 0x543   : > { %v1641_v51 = vpop.f32.mrf.mxu3 }
 0x544   : > { %v2859_v59 = vpack.i.bf16 %v1641_v51, %v1639_v44  ;;  %v1252_v32 = vsel %vm810_vm9, %v3647_v11, %v2842_v54  ;;  %v1253_v1 = vsel %vm810_vm9, %v3651_v30, %v2843_v23  ;;  %v3011_v23 = vld [vmem:[#allocation2 + $0x10] sm:$0xff] }
 0x546   : > { %2860 = vrot.lane.b32.xlu1 %v2859_v59, %s3060_s27  ;;  %v3713_v59 = vld [vmem:[%s3135_s18] sm:$0xff] }
 0x549   : > { %v1224_v42 = vpop.permute.xlu1 %1223 }
 0x54a   : > { %v1742_v52 = vpop.f32.mrf.mxu1  ;;  %v1254_v60 = vsel %vm810_vm9, %v3654_v31, %v1224_v42 }
 0x54b   : > { %v2864_v28 = vpack.i.bf16 %v1742_v52, %v1740_v43  ;;  %v1871_v52 = vperm.slane %v3713_v59, 2 }
 0x54d   : > { %2865 = vrot.lane.b32.xlu0 %v2864_v28, %s3061_s13  ;;  %v3009_v28 = vld [vmem:[#allocation2] sm:$0xff] }
 0x54e   : > { %1235 = vrot.lane.b32.xlu1 %v1111_v41, %s3060_s27 }
 0x556   : > { %1756 = vrot.lane.b32.xlu1 %v1543_v62, %s3059_s26 }
 0x562   : > { %v1745_v8 = vpop.f32.mrf.mxu1 }
 0x563   : > { %1780 = vrot.lane.b32.xlu1 %v1745_v8, %s3061_s13  ;;  %v3010_v8 = vld [vmem:[#allocation2 + $0x8] sm:$0xff] }
 0x564   : > { %v2846_v40 = vpop.permute.xlu1 %2845 }
 0x565   : > { %v2848_v22 = vunpack.i.h.bf16 %v2846_v40  ;;  %v2847_v9 = vunpack.i.l.bf16 %v2846_v40 }
 0x567   : > { %v1256_v53 = vsel %vm506_vm3, %v1253_v1, %v2848_v22  ;;  %v1255_v6 = vsel %vm506_vm3, %v1252_v32, %v2847_v9  ;;  %v3012_v32 = vld [vmem:[#allocation2 + $0x18] sm:$0xff] }
 0x56a   : > { %v1747_v34 = vpop.f32.mrf.mxu1 }
 0x57f   : > { %v2851_v18 = vpop.permute.xlu1 %2850 }
 0x580   : > { %v2853_v13 = vunpack.i.h.bf16 %v2851_v18  ;;  %v2852_v49 = vunpack.i.l.bf16 %v2851_v18  ;;  %v1644_v16 = vpop.f32.mrf.mxu3 }
 0x581   : > { %1768 = vrot.lane.b32.xlu2 %v1644_v16, %s3060_s27 }
 0x582   : > { %v1259_v2 = vsel %vm1258_vm12, %v1255_v6, %v2852_v49  ;;  %v1260_v12 = vsel %vm1258_vm12, %v1256_v53, %v2853_v13  ;;  %v3013_v53 = vld [vmem:[#allocation2 + $0x20] sm:$0x3] }
 0x583   : > { %v1806_v46 = vpack.c.bf16 %v1260_v12, %v1259_v2 }
 0x585   : > { %2702 = vmatmul.msk.bf16.vlgmr.msra.gmra.mxu2 %vm1833_vm13, %v1806_v46 }
 0x587   : > { %v2856_v30 = vpop.permute.xlu2 %2855 }
 0x588   : > { %v1646_v11 = vpop.f32.mrf.mxu3  ;;  %v2858_v57 = vunpack.i.h.bf16 %v2856_v30  ;;  %v2857_v5 = vunpack.i.l.bf16 %v2856_v30 }
 0x58a   : > { %v1785_v39 = vsel %vm810_vm9, %v3664_v50, %v2857_v5  ;;  %v1786_v56 = vsel %vm810_vm9, %v3666_v63, %v2858_v57 }
 0x58f   : > { %v1248_v20 = vpop.permute.xlu2 %1247 }
 0x5b8   : > { %v2861_v55 = vpop.permute.xlu1 %2860 }
 0x5b9   : > { %v2863_v37 = vunpack.i.h.bf16 %v2861_v55  ;;  %v2862_v58 = vunpack.i.l.bf16 %v2861_v55 }
 0x5bb   : > { %v1789_v19 = vsel %vm506_vm3, %v1786_v56, %v2863_v37  ;;  %v1788_v48 = vsel %vm506_vm3, %v1785_v39, %v2862_v58 }
 0x5bf   : > { %v2866_v61 = vpop.permute.xlu0 %2865 }
 0x5c0   : > { %v2868_v33 = vunpack.i.h.bf16 %v2866_v61  ;;  %v2867_v26 = vunpack.i.l.bf16 %v2866_v61  ;;  %v1236_v41 = vpop.permute.xlu1 %1235 }
 0x5c1   : > { %v1257_v0 = vsel %vm506_vm3, %v1254_v60, %v1236_v41 }
 0x5c2   : > { %v1791_v17 = vsel %vm1258_vm12, %v1788_v48, %v2867_v26  ;;  %v1792_v31 = vsel %vm1258_vm12, %v1789_v19, %v2868_v33  ;;  %v1261_v29 = vsel %vm1258_vm12, %v1257_v0, %v1248_v20 }
 0x5c3   : > { %v1797_v36 = vrot.slane %v1791_v17, 7  ;;  %v1798_v38 = vrot.slane %v1792_v31, 7 }
 0x5c5   : > { %v1799_v14 = vsel %vm887_vm8, %v1797_v36, %v1798_v38  ;;  %v1805_v50 = vsel %vm887_vm8, %v1261_v29, %v1797_v36 }
 0x5c6   : > { %v1807_v4 = vpack.c.bf16 %v1799_v14, %v1805_v50 }
 0x5c8   : > { %2703 = vmatmul.msk.bf16.gmra.mxu2 %vm1833_vm13, %v1807_v4  ;;  %v1757_v63 = vpop.permute.xlu1 %1756  ;;  %v2762_v4 = vld [vmem:[%s3162_s20 + $0x8] sm:$0xff] }
 0x5c9   : > { %v1787_v35 = vsel %vm810_vm9, %v3668_v27, %v1757_v63  ;;  %2032 = vmatpush.bf16.msrb.mxu3 %v2762_v4 }
 0x5d5   : > { %v1781_v62 = vpop.permute.xlu1 %1780 }
 0x5db   : > { %v1769_v10 = vpop.permute.xlu2 %1768 }
 0x5dc   : > { %v1790_v25 = vsel %vm506_vm3, %v1787_v35, %v1769_v10 }
 0x5dd   : > { %v1793_v24 = vsel %vm1258_vm12, %v1790_v25, %v1781_v62  ;;  %v2761_v62 = vld [vmem:[%s3162_s20] sm:$0xff] }
 0x5de   : > { %v1800_v44 = vrot.slane %v1793_v24, 7  ;;  %2033 = vmatpush.bf16.msrb.mxu3 %v2761_v62 }
 0x5e0   : > { %v1801_v43 = vsel %vm887_vm8, %v1798_v38, %v1800_v44 }
 0x5e1   : > { %v1808_v51 = vpack.c.bf16 %v1801_v43, %v1801_v43 }
 0x5e3   : > { %2704 = vmatmul.msk.bf16.gmra.mxu2 %vm1833_vm13, %v1808_v51 }
 0x608   : > { %v1852_v47 = vpop.f32.mrf.mxu2 }
 0x609   : > { %v1866_v7 = vadd.f32 %v3009_v28, %v1852_v47 }
 0x60b   : > { %v3716_v27 = vadd.f32 %v1871_v52, %v1866_v7 }
 0x60d   : > { %v1877_v15 = vsel %vm506_vm3, %v3716_v27, 0.0 }
 0x60e   : > { %1878 = vadd.xlane.f32.xlu0 %v1877_v15 }
 0x610   : > { %v1854_v45 = vpop.f32.mrf.mxu2 }
 0x611   : > { %v1867_v3 = vadd.f32 %v3010_v8, %v1854_v45 }
 0x613   : > { %v3720_v34 = vadd.f32 %v1871_v52, %v1867_v3 }
 0x615   : > { %v1880_v42 = vsel %vm506_vm3, %v3720_v34, 0.0 }
 0x616   : > { %1881 = vadd.xlane.f32.xlu2 %v1880_v42 }
 0x64b   : > { %v1857_v40 = vpop.f32.mrf.mxu2 }
 0x64c   : > { %v1868_v54 = vadd.f32 %v3011_v23, %v1857_v40  ;;  %v3768_v23 = vperm.slane %v3713_v59, 3 }
 0x64e   : > { %v3724_v22 = vadd.f32 %v1871_v52, %v1868_v54 }
 0x650   : > { %v1883_v9 = vsel %vm506_vm3, %v3724_v22, 0.0 }
 0x651   : > { %1884 = vadd.xlane.f32.xlu1 %v1883_v9 }
 0x653   : > { %v1859_v18 = vpop.f32.mrf.mxu2 }
 0x654   : > { %v1869_v1 = vadd.f32 %v3012_v32, %v1859_v18  ;;  %v1993_v32 = vperm.slane %v3713_v59, 4 }
 0x656   : > { %v3728_v13 = vadd.f32 %v1871_v52, %v1869_v1 }
 0x658   : > { %v1886_v49 = vsel %vm506_vm3, %v3728_v13, 0.0 }
 0x659   : > { %1887 = vadd.xlane.f32.xlu0 %v1886_v49 }
 0x666   : > { %v1862_v16 = vpop.f32.mrf.mxu2 }
 0x667   : > { %v1870_v6 = vadd.f32 %v3013_v53, %v1862_v16 }
 0x669   : > { %v3732_v2 = vadd.f32 %v1871_v52, %v1870_v6 }
 0x66b   : > { %v1889_v12 = vsel %vm519_vm2, %v3732_v2, 0.0 }
 0x66c   : > { %1890 = vadd.xlane.f32.xlu2 %v1889_v12 }
 0x66e   : > { %v1864_v46 = vpop.f32.mrf.mxu2 }
 0x681   : > { %v1879_v11 = vpop.xlane.xlu0 %1878 }
 0x682   : > { %v1892_v55 = vmul.f32 %v1879_v11, %v3190_v21 }
 0x684   : > { %v1897_v30 = vsub.f32 %v3716_v27, %v1892_v55 }
 0x686   : > { %v1902_v57 = vmul.f32 %v1897_v30, %v1897_v30 }
 0x688   : > { %v1907_v5 = vsel %vm506_vm3, %v1902_v57, 0.0 }
 0x689   : > { %1908 = vadd.xlane.f32.xlu1 %v1907_v5  ;;  %v1882_v37 = vpop.xlane.xlu2 %1881 }
 0x68a   : > { %v1893_v58 = vmul.f32 %v1882_v37, %v3190_v21 }
 0x68c   : > { %v1898_v60 = vsub.f32 %v3720_v34, %v1893_v58 }
 0x68e   : > { %v1903_v61 = vmul.f32 %v1898_v60, %v1898_v60 }
 0x690   : > { %v1910_v39 = vsel %vm506_vm3, %v1903_v61, 0.0 }
 0x691   : > { %1911 = vadd.xlane.f32.xlu0 %v1910_v39 }
 0x6c4   : > { %v1885_v56 = vpop.xlane.xlu1 %1884 }
 0x6c5   : > { %v1894_v33 = vmul.f32 %v1885_v56, %v3190_v21 }
 0x6c7   : > { %v3744_v26 = vsub.f32 %v3724_v22, %v1894_v33 }
 0x6c9   : > { %v1904_v41 = vmul.f32 %v3744_v26, %v3744_v26 }
 0x6cb   : > { %v1913_v19 = vsel %vm506_vm3, %v1904_v41, 0.0 }
 0x6cc   : > { %v1888_v48 = vpop.xlane.xlu0 %1887  ;;  %1914 = vadd.xlane.f32.xlu2 %v1913_v19 }
 0x6cd   : > { %v1895_v0 = vmul.f32 %v1888_v48, %v3190_v21 }
 0x6cf   : > { %v3751_v17 = vsub.f32 %v3728_v13, %v1895_v0 }
 0x6d1   : > { %v1905_v31 = vmul.f32 %v3751_v17, %v3751_v17 }
 0x6d3   : > { %v1916_v20 = vsel %vm506_vm3, %v1905_v31, 0.0 }
 0x6d4   : > { %1917 = vadd.xlane.f32.xlu1 %v1916_v20 }
 0x6df   : > { %v1891_v36 = vpop.xlane.xlu2 %1890 }
 0x6e0   : > { %v1896_v38 = vmul.f32 %v1891_v36, %v3190_v21 }
 0x6e2   : > { %v3758_v29 = vsub.f32 %v3732_v2, %v1896_v38 }
 0x6e4   : > { %v1906_v14 = vmul.f32 %v3758_v29, %v3758_v29 }
 0x6e6   : > { %v1919_v50 = vsel %vm519_vm2, %v1906_v14, 0.0 }
 0x6e7   : > { %1920 = vadd.xlane.f32.xlu0 %v1919_v50 }
 0x6fc   : > { %v1909_v63 = vpop.xlane.xlu1 %1908 }
 0x6fd   : > { %v1922_v35 = vmul.f32 %v1909_v63, %v3190_v21 }
 0x6ff   : > { %v1927_v10 = vadd.f32 1e-05, %v1922_v35 }
 0x701   : > { %2978 = vrsqrt.f32 %v1927_v10  ;;  %vm1938_vm15 = vweird.f32 %v1927_v10 }
 0x704   : > { %v1912_v25 = vpop.xlane.xlu0 %1911 }
 0x705   : > { %v1923_v24 = vmul.f32 %v1912_v25, %v3190_v21 }
 0x707   : > { %v2979_v44 = vpop.eup %2978  ;;  %v1928_v43 = vadd.f32 1e-05, %v1923_v24 }
 0x708   : > { %v1933_v51 = vmul.f32 %v2979_v44, %v1927_v10  ;;  %vm1939_vm14 = vweird.f32 %v2979_v44 }
 0x709   : > { %2980 = vrsqrt.f32 %v1928_v43  ;;  %vm1940_vm0 = vmor %vm1938_vm15, %vm1939_vm14  ;;  %vm1948_vm4 = vweird.f32 %v1928_v43 }
 0x70a   : > { %v1934_v52 = vmul.f32 %v2979_v44, %v1933_v51 }
 0x70c   : > { %v1935_v47 = vmul.f32 0.5, %v1934_v52 }
 0x70e   : > { %v1936_v28 = vsub.f32 1.5, %v1935_v47 }
 0x70f   : > { %v2981_v7 = vpop.eup %2980 }
 0x710   : > { %v1937_v15 = vmul.f32 %v2979_v44, %v1936_v28  ;;  %v1943_v45 = vmul.f32 %v2981_v7, %v1928_v43  ;;  %vm1949_vm1 = vweird.f32 %v2981_v7 }
 0x711   : > { %vm1950_vm5 = vmor %vm1948_vm4, %vm1949_vm1 }
 0x712   : > { %v1944_v8 = vmul.f32 %v2981_v7, %v1943_v45  ;;  %v1941_v3 = vsel %vm1940_vm0, %v2979_v44, %v1937_v15 }
 0x713   : > { %v1982_v54 = vmul.f32 %v1941_v3, %v1897_v30 }
 0x714   : > { %v1945_v42 = vmul.f32 0.5, %v1944_v8  ;;  %v3790_v8 = vld [vmem:[%s419_s15] ss:$0 sm:$0xff] }
 0x715   : > { %v1988_v1 = vmul.f32 %v3768_v23, %v1982_v54 }
 0x716   : > { %v1946_v40 = vsub.f32 1.5, %v1945_v42 }
 0x717   : > { %v1994_v53 = vadd.f32 %v1993_v32, %v1988_v1 }
 0x718   : > { %v1947_v9 = vmul.f32 %v2981_v7, %v1946_v40 }
 0x71a   : > { %v1951_v18 = vsel %vm1950_vm5, %v2981_v7, %v1947_v9 }
 0x71b   : > { %v1983_v49 = vmul.f32 %v1951_v18, %v1898_v60 }
 0x71d   : > { %v1989_v16 = vmul.f32 %v3768_v23, %v1983_v49 }
 0x71f   : > { %v1995_v6 = vadd.f32 %v1993_v32, %v1989_v16 }
 0x721   : > { %v1999_v12 = vpack.c.bf16 %v1995_v6, %v1994_v53 }
 0x723   : > { %2713 = vmatmul.msk.bf16.vlgmr.msrb.gmra.mxu3 %vm506_vm3, %v1999_v12 }
 0x73f   : > { %v1915_v46 = vpop.xlane.xlu2 %1914 }
 0x740   : > { %v1924_v11 = vmul.f32 %v1915_v46, %v3190_v21 }
 0x742   : > { %v1929_v55 = vadd.f32 1e-05, %v1924_v11 }
 0x744   : > { %2982 = vrsqrt.f32 %v1929_v55  ;;  %vm1958_vm7 = vweird.f32 %v1929_v55 }
 0x747   : > { %v1918_v30 = vpop.xlane.xlu1 %1917 }
 0x748   : > { %v1925_v57 = vmul.f32 %v1918_v30, %v3190_v21  ;;  %v2766_v30 = vld [vmem:[%s3167_s24 + $0x18] sm:$0xff] }
 0x749   : > { %2309 = vmatpush.bf16.msrb.mxu0 %v2766_v30 }
 0x74a   : > { %v2983_v5 = vpop.eup %2982  ;;  %v1930_v37 = vadd.f32 1e-05, %v1925_v57 }
 0x74b   : > { %v1953_v58 = vmul.f32 %v2983_v5, %v1929_v55  ;;  %vm1959_vm6 = vweird.f32 %v2983_v5 }
 0x74c   : > { %2984 = vrsqrt.f32 %v1930_v37  ;;  %vm1960_vm8 = vmor %vm1958_vm7, %vm1959_vm6  ;;  %vm1968_vm10 = vweird.f32 %v1930_v37 }
 0x74d   : > { %v1954_v60 = vmul.f32 %v2983_v5, %v1953_v58 }
 0x74f   : > { %v1955_v61 = vmul.f32 0.5, %v1954_v60 }
 0x751   : > { %v1956_v39 = vsub.f32 1.5, %v1955_v61 }
 0x752   : > { %v2985_v56 = vpop.eup %2984 }
 0x753   : > { %v1957_v33 = vmul.f32 %v2983_v5, %v1956_v39  ;;  %v1963_v41 = vmul.f32 %v2985_v56, %v1930_v37  ;;  %vm1969_vm9 = vweird.f32 %v2985_v56 }
 0x754   : > { %vm1970_vm11 = vmor %vm1968_vm10, %vm1969_vm9 }
 0x755   : > { %v1964_v19 = vmul.f32 %v2985_v56, %v1963_v41  ;;  %v1961_v48 = vsel %vm1960_vm8, %v2983_v5, %v1957_v33 }
 0x756   : > { %v1984_v20 = vmul.f32 %v1961_v48, %v3744_v26 }
 0x757   : > { %v1965_v0 = vmul.f32 0.5, %v1964_v19 }
 0x758   : > { %v1990_v35 = vmul.f32 %v3768_v23, %v1984_v20 }
 0x759   : > { %v1966_v31 = vsub.f32 1.5, %v1965_v0 }
 0x75a   : > { %v1921_v36 = vpop.xlane.xlu0 %1920  ;;  %v1996_v62 = vadd.f32 %v1993_v32, %v1990_v35  ;;  %v2763_v35 = vld [vmem:[%s3167_s24] sm:$0xff] }
 0x75b   : > { %v1967_v38 = vmul.f32 %v2985_v56, %v1966_v31  ;;  %v1926_v14 = vmul.f32 %v1921_v36, %v3190_v21  ;;  %v2764_v36 = vld [vmem:[%s3167_s24 + $0x8] sm:$0xff] }
 0x75d   : > { %v1971_v50 = vsel %vm1970_vm11, %v2985_v56, %v1967_v38  ;;  %v1931_v4 = vadd.f32 1e-05, %v1926_v14  ;;  %v2765_v56 = vld [vmem:[%s3167_s24 + $0x10] sm:$0xff] }
 0x75e   : > { %v1985_v63 = vmul.f32 %v1971_v50, %v3751_v17  ;;  %2310 = vmatpush.bf16.msrb.mxu0 %v2765_v56 }
 0x75f   : > { %2986 = vrsqrt.f32 %v1931_v4  ;;  %vm1978_vm14 = vweird.f32 %v1931_v4 }
 0x760   : > { %v1991_v10 = vmul.f32 %v3768_v23, %v1985_v63 }
 0x762   : > { %v1997_v25 = vadd.f32 %v1993_v32, %v1991_v10  ;;  %2311 = vmatpush.bf16.msrb.mxu0 %v2764_v36 }
 0x764   : > { %v2000_v24 = vpack.c.bf16 %v1997_v25, %v1996_v62 }
 0x765   : > { %v2987_v44 = vpop.eup %2986 }
 0x766   : > { %v1973_v26 = vmul.f32 %v2987_v44, %v1931_v4  ;;  %2714 = vmatmul.msk.bf16.gmra.mxu3 %vm506_vm3, %v2000_v24  ;;  %vm1979_vm12 = vweird.f32 %v2987_v44  ;;  %2312 = vmatpush.bf16.msrb.mxu0 %v2763_v35 }
 0x767   : > { %vm1980_vm15 = vmor %vm1978_vm14, %vm1979_vm12 }
 0x768   : > { %v1974_v43 = vmul.f32 %v2987_v44, %v1973_v26 }
 0x76a   : > { %v1975_v51 = vmul.f32 0.5, %v1974_v43 }
 0x76c   : > { %v1976_v52 = vsub.f32 1.5, %v1975_v51 }
 0x76e   : > { %v1977_v47 = vmul.f32 %v2987_v44, %v1976_v52 }
 0x770   : > { %v1981_v17 = vsel %vm1980_vm15, %v2987_v44, %v1977_v47 }
 0x771   : > { %v1986_v28 = vmul.f32 %v1981_v17, %v3758_v29 }
 0x773   : > { %v1992_v7 = vmul.f32 %v3768_v23, %v1986_v28 }
 0x775   : > { %v1998_v15 = vadd.f32 %v1993_v32, %v1992_v7 }
 0x777   : > { %v2001_v45 = vpack.c.bf16 %v1998_v15, %v1998_v15 }
 0x779   : > { %2715 = vmatmul.msk.bf16.gmra.mxu3 %vm506_vm3, %v2001_v45 }
 0x7a6   : > { %v2035_v3 = vpop.f32.mrf.mxu3 }
 0x7a7   : > { %v3793_v42 = vadd.f32 %v3790_v8, %v2035_v3 }
 0x7a9   : > { %v3796_v40 = vmul.f32 0.70710677, %v3793_v42 }
 0x7ab   : > { %v2059_v29 = vmul.f32 %v3796_v40, %v3796_v40 }
 0x7ad   : > { %v2060_v23 = vmin.f32 %v2059_v29, 16.0 }
 0x7ae   : > { %v2037_v54 = vpop.f32.mrf.mxu3 }
 0x7af   : > { %v2061_v9 = vmul.f32 2.1237322e-06, %v2060_v23  ;;  %v2072_v18 = vmul.f32 3.8918573e-05, %v2060_v23  ;;  %v3801_v32 = vadd.f32 %v3790_v8, %v2037_v54 }
 0x7b1   : > { %v2062_v1 = vadd.f32 0.00028619796, %v2061_v9  ;;  %v2073_v49 = vadd.f32 0.001143296, %v2072_v18  ;;  %v3804_v16 = vmul.f32 0.70710677, %v3801_v32 }
 0x7b3   : > { %v2074_v53 = vmul.f32 %v2073_v49, %v2060_v23  ;;  %v2099_v6 = vmul.f32 %v3804_v16, %v3804_v16  ;;  %v2063_v12 = vmul.f32 %v2062_v1, %v2060_v23 }
 0x7b5   : > { %v2075_v46 = vadd.f32 0.014752088, %v2074_v53  ;;  %v2100_v11 = vmin.f32 %v2099_v6, 16.0  ;;  %v2064_v37 = vadd.f32 0.0036580483, %v2063_v12 }
 0x7b7   : > { %v2076_v55 = vmul.f32 %v2075_v46, %v2060_v23  ;;  %v2101_v57 = vmul.f32 2.1237322e-06, %v2100_v11  ;;  %v2112_v5 = vmul.f32 3.8918573e-05, %v2100_v11  ;;  %v2065_v19 = vmul.f32 %v2064_v37, %v2060_v23 }
 0x7b9   : > { %v2077_v58 = vadd.f32 0.112945676, %v2076_v55  ;;  %v2102_v60 = vadd.f32 0.00028619796, %v2101_v57  ;;  %v2113_v61 = vadd.f32 0.001143296, %v2112_v5 }
 0x7ba   : > { %v2066_v14 = vadd.f32 0.05243302, %v2065_v19  ;;  %v2050_v19 = vmul.f32 0.5, %v3801_v32 }
 0x7bb   : > { %v2078_v39 = vmul.f32 %v2077_v58, %v2060_v23  ;;  %v2103_v33 = vmul.f32 %v2102_v60, %v2100_v11  ;;  %v2114_v41 = vmul.f32 %v2113_v61, %v2100_v11 }
 0x7bc   : > { %v2067_v62 = vmul.f32 %v2066_v14, %v2060_v23 }
 0x7bd   : > { %v2079_v48 = vadd.f32 0.4994258, %v2078_v39  ;;  %v2104_v0 = vadd.f32 0.0036580483, %v2103_v33  ;;  %v2115_v31 = vadd.f32 0.014752088, %v2114_v41 }
 0x7be   : > { %v2068_v43 = vadd.f32 0.18741608, %v2067_v62  ;;  %v2049_v41 = vmul.f32 0.5, %v3793_v42 }
 0x7bf   : > { %v2080_v20 = vmul.f32 %v2079_v48, %v2060_v23  ;;  %v2116_v38 = vmul.f32 %v2115_v31, %v2100_v11  ;;  %v2105_v4 = vmul.f32 %v2104_v0, %v2100_v11 }
 0x7c0   : > { %v2069_v28 = vmul.f32 %v2068_v43, %v2060_v23 }
 0x7c1   : > { %v2081_v50 = vadd.f32 1.0, %v2080_v20  ;;  %v2117_v63 = vadd.f32 0.112945676, %v2116_v38  ;;  %v2106_v25 = vadd.f32 0.05243302, %v2105_v4 }
 0x7c2   : > { %v2070_v54 = vadd.f32 1.1283791, %v2069_v28 }
 0x7c3   : > { %2988 = vrcp.f32 %v2081_v50  ;;  %v2118_v10 = vmul.f32 %v2117_v63, %v2100_v11  ;;  %v2107_v52 = vmul.f32 %v2106_v25, %v2100_v11  ;;  %v2093_v15 = vand.u32 2147483648, %v2081_v50 }
 0x7c4   : > { %v2091_v3 = vand.u32 2147483647, %v2081_v50  ;;  %vm2087_vm1 = vweird.f32 %v2081_v50  ;;  %v2071_v12 = vmul.f32 %v2070_v54, %v3796_v40 }
 0x7c5   : > { %v2119_v24 = vadd.f32 0.4994258, %v2118_v10  ;;  %v2108_v45 = vadd.f32 0.18741608, %v2107_v52  ;;  %v2094_v1 = vor.u32 1.1754944e-38, %v2093_v15 }
 0x7c6   : > { %vm2092_vm5 = vcmp.eq.f32.partialorder %v2091_v3, 8.507059e+37 }
 0x7c7   : > { %v2120_v44 = vmul.f32 %v2119_v24, %v2100_v11  ;;  %v2109_v49 = vmul.f32 %v2108_v45, %v2100_v11 }
 0x7c9   : > { %v2989_v26 = vpop.eup %2988  ;;  %v2121_v47 = vadd.f32 1.0, %v2120_v44  ;;  %v2110_v23 = vadd.f32 1.1283791, %v2109_v49 }
 0x7ca   : > { %v2083_v51 = vmul.f32 %v2989_v26, %v2081_v50  ;;  %vm2088_vm0 = vweird.f32 %v2989_v26 }
 0x7cb   : > { %2990 = vrcp.f32 %v2121_v47  ;;  %vm2089_vm4 = vmor %vm2087_vm1, %vm2088_vm0  ;;  %v2133_v55 = vand.u32 2147483648, %v2121_v47  ;;  %v2131_v5 = vand.u32 2147483647, %v2121_v47  ;;  %vm2127_vm7 = vweird.f32 %v2121_v47 }
 0x7cc   : > { %v2084_v17 = vsub.f32 1.0, %v2083_v51  ;;  %v2111_v61 = vmul.f32 %v2110_v23, %v3804_v16 }
 0x7cd   : > { %v2134_v58 = vor.u32 1.1754944e-38, %v2133_v55  ;;  %vm2132_vm9 = vcmp.eq.f32.partialorder %v2131_v5, 8.507059e+37 }
 0x7ce   : > { %v2085_v7 = vmul.f32 %v2989_v26, %v2084_v17 }
 0x7d0   : > { %v2086_v29 = vadd.f32 %v2989_v26, %v2085_v7 }
 0x7d1   : > { %v2991_v9 = vpop.eup %2990 }
 0x7d2   : > { %v2090_v18 = vsel %vm2089_vm4, %v2989_v26, %v2086_v29  ;;  %v2123_v53 = vmul.f32 %v2991_v9, %v2121_v47  ;;  %vm2128_vm6 = vweird.f32 %v2991_v9 }
 0x7d3   : > { %v2095_v6 = vsel %vm2092_vm5, %v2094_v1, %v2090_v18  ;;  %vm2129_vm8 = vmor %vm2127_vm7, %vm2128_vm6 }
 0x7d4   : > { %v2124_v46 = vsub.f32 1.0, %v2123_v53  ;;  %v2096_v30 = vmul.f32 %v2095_v6, %v2071_v12 }
 0x7d6   : > { %v2125_v57 = vmul.f32 %v2991_v9, %v2124_v46  ;;  %v2716_v60 = vclamps-f32 %v2096_v30, 1.0 }
 0x7d8   : > { %v2126_v37 = vadd.f32 %v2991_v9, %v2125_v57  ;;  %v2259_v33 = vadd.f32 1.0, %v2716_v60 }
 0x7da   : > { %v2130_v11 = vsel %vm2129_vm8, %v2991_v9, %v2126_v37  ;;  %v2264_v0 = vmul.f32 %v2259_v33, %v2049_v41 }
 0x7db   : > { %v2135_v39 = vsel %vm2132_vm9, %v2134_v58, %v2130_v11 }
 0x7dc   : > { %v2136_v56 = vmul.f32 %v2135_v39, %v2111_v61 }
 0x7de   : > { %v2717_v40 = vclamps-f32 %v2136_v56, 1.0 }
 0x7e0   : > { %v2260_v48 = vadd.f32 1.0, %v2717_v40 }
 0x7e2   : > { %v2265_v31 = vmul.f32 %v2260_v48, %v2050_v19 }
 0x7e4   : > { %v2269_v20 = vpack.c.bf16 %v2265_v31, %v2264_v0 }
 0x7e6   : > { %2737 = vmatmul.msk.bf16.vlgmr.msrb.gmra.mxu0 %vm1833_vm13, %v2269_v20 }
 0x7e9   : > { %v2040_v36 = vpop.f32.mrf.mxu3 }
 0x7ea   : > { %v3818_v38 = vadd.f32 %v3790_v8, %v2040_v36 }
 0x7ec   : > { %v3821_v16 = vmul.f32 0.70710677, %v3818_v38 }
 0x7ee   : > { %v2139_v14 = vmul.f32 %v3821_v16, %v3821_v16 }
 0x7f0   : > { %v2140_v50 = vmin.f32 %v2139_v14, 16.0 }
 0x7f1   : > { %v2042_v42 = vpop.f32.mrf.mxu3 }
 0x7f2   : > { %v2141_v4 = vmul.f32 2.1237322e-06, %v2140_v50  ;;  %v2152_v32 = vmul.f32 3.8918573e-05, %v2140_v50  ;;  %v3826_v63 = vadd.f32 %v3790_v8, %v2042_v42 }
 0x7f4   : > { %v2142_v35 = vadd.f32 0.00028619796, %v2141_v4  ;;  %v2153_v10 = vadd.f32 0.001143296, %v2152_v32  ;;  %v3829_v62 = vmul.f32 0.70710677, %v3826_v63 }
 0x7f6   : > { %v2154_v25 = vmul.f32 %v2153_v10, %v2140_v50  ;;  %v2179_v24 = vmul.f32 %v3829_v62, %v3829_v62  ;;  %v2143_v44 = vmul.f32 %v2142_v35, %v2140_v50 }
 0x7f8   : > { %v2155_v26 = vadd.f32 0.014752088, %v2154_v25  ;;  %v3833_v43 = vmin.f32 %v2179_v24, 16.0  ;;  %v2144_v17 = vadd.f32 0.0036580483, %v2143_v44 }
 0x7fa   : > { %v2156_v51 = vmul.f32 %v2155_v26, %v2140_v50  ;;  %v2181_v52 = vmul.f32 2.1237322e-06, %v3833_v43  ;;  %v2192_v47 = vmul.f32 3.8918573e-05, %v3833_v43  ;;  %v2145_v1 = vmul.f32 %v2144_v17, %v2140_v50 }
 0x7fc   : > { %v2157_v28 = vadd.f32 0.112945676, %v2156_v51  ;;  %v2045_v7 = vpop.f32.mrf.mxu3  ;;  %v2182_v15 = vadd.f32 0.00028619796, %v2181_v52  ;;  %v2193_v45 = vadd.f32 0.001143296, %v2192_v47 }
 0x7fd   : > { %v3838_v3 = vadd.f32 %v3790_v8, %v2045_v7  ;;  %v2146_v55 = vadd.f32 0.05243302, %v2145_v1 }
 0x7fe   : > { %v2158_v29 = vmul.f32 %v2157_v28, %v2140_v50  ;;  %v2183_v54 = vmul.f32 %v2182_v15, %v3833_v43  ;;  %v2194_v9 = vmul.f32 %v2193_v45, %v3833_v43 }
 0x7ff   : > { %v3843_v18 = vmul.f32 0.70710677, %v3838_v3  ;;  %v2147_v11 = vmul.f32 %v2146_v55, %v2140_v50 }
 0x800   : > { %v2159_v49 = vadd.f32 0.4994258, %v2158_v29  ;;  %v2184_v53 = vadd.f32 0.0036580483, %v2183_v54  ;;  %v2195_v6 = vadd.f32 0.014752088, %v2194_v9 }
 0x801   : > { %v2219_v12 = vmul.f32 %v3843_v18, %v3843_v18  ;;  %v2148_v0 = vadd.f32 0.18741608, %v2147_v11 }
 0x802   : > { %v2160_v46 = vmul.f32 %v2159_v49, %v2140_v50  ;;  %v2196_v23 = vmul.f32 %v2195_v6, %v3833_v43  ;;  %v2185_v5 = vmul.f32 %v2184_v53, %v3833_v43 }
 0x803   : > { %v3848_v8 = vmin.f32 %v2219_v12, 16.0  ;;  %v2149_v35 = vmul.f32 %v2148_v0, %v2140_v50 }
 0x804   : > { %v2161_v30 = vadd.f32 1.0, %v2160_v46  ;;  %v2047_v57 = vpop.f32.mrf.mxu3  ;;  %v2197_v37 = vadd.f32 0.112945676, %v2196_v23  ;;  %v2186_v56 = vadd.f32 0.05243302, %v2185_v5 }
 0x805   : > { %v2221_v58 = vmul.f32 2.1237322e-06, %v3848_v8  ;;  %v2232_v39 = vmul.f32 3.8918573e-05, %v3848_v8  ;;  %v2150_v17 = vadd.f32 1.1283791, %v2149_v35 }
 0x806   : > { %2992 = vrcp.f32 %v2161_v30  ;;  %v2198_v60 = vmul.f32 %v2197_v37, %v3833_v43  ;;  %v2187_v36 = vmul.f32 %v2186_v56, %v3833_v43  ;;  %v2173_v24 = vand.u32 2147483648, %v2161_v30 }
 0x807   : > { %v2222_v61 = vadd.f32 0.00028619796, %v2221_v58  ;;  %v2233_v40 = vadd.f32 0.001143296, %v2232_v39  ;;  %v2171_v26 = vand.u32 2147483647, %v2161_v30  ;;  %vm2167_vm11 = vweird.f32 %v2161_v30 }
 0x808   : > { %v2199_v33 = vadd.f32 0.4994258, %v2198_v60  ;;  %v2188_v44 = vadd.f32 0.18741608, %v2187_v36  ;;  %v2174_v45 = vor.u32 1.1754944e-38, %v2173_v24  ;;  %v2151_v49 = vmul.f32 %v2150_v17, %v3821_v16 }
 0x809   : > { %v2223_v19 = vmul.f32 %v2222_v61, %v3848_v8  ;;  %v2234_v31 = vmul.f32 %v2233_v40, %v3848_v8  ;;  %vm2172_vm14 = vcmp.eq.f32.partialorder %v2171_v26, 8.507059e+37  ;;  %v2053_v26 = vmul.f32 0.5, %v3838_v3 }
 0x80a   : > { %v2200_v41 = vmul.f32 %v2199_v33, %v3833_v43  ;;  %v2189_v50 = vmul.f32 %v2188_v44, %v3833_v43  ;;  %v2333_v17 = vperm.slane %v3713_v59, 5 }
 0x80b   : > { %v2235_v42 = vadd.f32 0.014752088, %v2234_v31  ;;  %v2224_v32 = vadd.f32 0.0036580483, %v2223_v19  ;;  %v2051_v19 = vmul.f32 0.5, %v3818_v38 }
 0x80c   : > { %v2993_v48 = vpop.eup %2992  ;;  %v2201_v14 = vadd.f32 1.0, %v2200_v41  ;;  %v2190_v6 = vadd.f32 1.1283791, %v2189_v50 }
 0x80d   : > { %v2163_v20 = vmul.f32 %v2993_v48, %v2161_v30  ;;  %v2236_v10 = vmul.f32 %v2235_v42, %v3848_v8  ;;  %vm2168_vm10 = vweird.f32 %v2993_v48  ;;  %v2225_v47 = vmul.f32 %v2224_v32, %v3848_v8 }
 0x80e   : > { %2994 = vrcp.f32 %v2201_v14  ;;  %vm2169_vm12 = vmor %vm2167_vm11, %vm2168_vm10  ;;  %v2213_v12 = vand.u32 2147483648, %v2201_v14  ;;  %v2211_v30 = vand.u32 2147483647, %v2201_v14  ;;  %vm2207_vm0 = vweird.f32 %v2201_v14 }
 0x80f   : > { %v2164_v4 = vsub.f32 1.0, %v2163_v20  ;;  %v2237_v51 = vadd.f32 0.112945676, %v2236_v10  ;;  %v2226_v9 = vadd.f32 0.05243302, %v2225_v47  ;;  %v2191_v16 = vmul.f32 %v2190_v6, %v3829_v62 }
 0x810   : > { %v2214_v37 = vor.u32 1.1754944e-38, %v2213_v12  ;;  %vm2212_vm4 = vcmp.eq.f32.partialorder %v2211_v30, 8.507059e+37 }
 0x811   : > { %v2165_v25 = vmul.f32 %v2993_v48, %v2164_v4  ;;  %v2238_v28 = vmul.f32 %v2237_v51, %v3848_v8  ;;  %v2227_v57 = vmul.f32 %v2226_v9, %v3848_v8 }
 0x813   : > { %v2166_v52 = vadd.f32 %v2993_v48, %v2165_v25  ;;  %v2239_v1 = vadd.f32 0.4994258, %v2238_v28  ;;  %v2228_v11 = vadd.f32 0.18741608, %v2227_v57 }
 0x814   : > { %v2995_v7 = vpop.eup %2994 }
 0x815   : > { %v2170_v15 = vsel %vm2169_vm12, %v2993_v48, %v2166_v52  ;;  %v2203_v29 = vmul.f32 %v2995_v7, %v2201_v14  ;;  %v2240_v46 = vmul.f32 %v2239_v1, %v3848_v8  ;;  %vm2208_vm15 = vweird.f32 %v2995_v7 }
 0x816   : > { %v2175_v54 = vsel %vm2172_vm14, %v2174_v45, %v2170_v15  ;;  %vm2209_vm1 = vmor %vm2207_vm0, %vm2208_vm15  ;;  %v2229_v41 = vmul.f32 %v2228_v11, %v3848_v8  ;;  %v2052_v48 = vmul.f32 0.5, %v3826_v63 }
 0x817   : > { %v2204_v53 = vsub.f32 1.0, %v2203_v29  ;;  %v2176_v23 = vmul.f32 %v2175_v54, %v2151_v49  ;;  %v2241_v5 = vadd.f32 1.0, %v2240_v46 }
 0x818   : > { %v2230_v62 = vadd.f32 1.1283791, %v2229_v41 }
 0x819   : > { %v2205_v55 = vmul.f32 %v2995_v7, %v2204_v53  ;;  %2996 = vrcp.f32 %v2241_v5  ;;  %v2718_v58 = vclamps-f32 %v2176_v23, 1.0  ;;  %v2253_v42 = vand.u32 2147483648, %v2241_v5 }
 0x81a   : > { %v2251_v32 = vand.u32 2147483647, %v2241_v5  ;;  %vm2247_vm6 = vweird.f32 %v2241_v5  ;;  %v2231_v38 = vmul.f32 %v2230_v62, %v3843_v18 }
 0x81b   : > { %v2206_v43 = vadd.f32 %v2995_v7, %v2205_v55  ;;  %v2261_v56 = vadd.f32 1.0, %v2718_v58  ;;  %v2254_v8 = vor.u32 1.1754944e-38, %v2253_v42 }
 0x81c   : > { %vm2252_vm8 = vcmp.eq.f32.partialorder %v2251_v32, 8.507059e+37 }
 0x81d   : > { %v2210_v60 = vsel %vm2209_vm1, %v2995_v7, %v2206_v43  ;;  %v2266_v20 = vmul.f32 %v2261_v56, %v2051_v19 }
 0x81e   : > { %v2215_v61 = vsel %vm2212_vm4, %v2214_v37, %v2210_v60 }
 0x81f   : > { %v2216_v39 = vmul.f32 %v2215_v61, %v2191_v16  ;;  %v2997_v40 = vpop.eup %2996 }
 0x820   : > { %v2243_v31 = vmul.f32 %v2997_v40, %v2241_v5  ;;  %vm2248_vm5 = vweird.f32 %v2997_v40 }
 0x821   : > { %v2719_v33 = vclamps-f32 %v2216_v39, 1.0  ;;  %vm2249_vm7 = vmor %vm2247_vm6, %vm2248_vm5 }
 0x822   : > { %v2244_v14 = vsub.f32 1.0, %v2243_v31 }
 0x823   : > { %v2262_v0 = vadd.f32 1.0, %v2719_v33 }
 0x824   : > { %v2245_v4 = vmul.f32 %v2997_v40, %v2244_v14 }
 0x825   : > { %v2267_v36 = vmul.f32 %v2262_v0, %v2052_v48 }
 0x826   : > { %v2246_v10 = vadd.f32 %v2997_v40, %v2245_v4 }
 0x827   : > { %v2270_v35 = vpack.c.bf16 %v2267_v36, %v2266_v20 }
 0x828   : > { %v2250_v63 = vsel %vm2249_vm7, %v2997_v40, %v2246_v10 }
 0x829   : > { %2738 = vmatmul.msk.bf16.gmra.mxu0 %vm1833_vm13, %v2270_v35  ;;  %v2255_v25 = vsel %vm2252_vm8, %v2254_v8, %v2250_v63 }
 0x82a   : > { %v2256_v24 = vmul.f32 %v2255_v25, %v2231_v38 }
 0x82c   : > { %v2720_v44 = vclamps-f32 %v2256_v24, 1.0 }
 0x82e   : > { %v2263_v51 = vadd.f32 1.0, %v2720_v44 }
 0x830   : > { %v2268_v52 = vmul.f32 %v2263_v51, %v2053_v26 }
 0x832   : > { %v2271_v47 = vpack.c.bf16 %v2268_v52, %v2268_v52 }
 0x839   : > { %2739 = vmatmul.msk.bf16.gmra.mxu0 %vm1833_vm13, %v2271_v47  ;;  %v3909_v47 = vperm.slane %v3713_v59, 6 }
 0x863   : > { %v2314_v28 = vpop.f32.mrf.mxu0 }
 0x864   : > { %v2328_v7 = vadd.f32 %v2314_v28, %v3716_v27 }
 0x866   : > { %v2334_v15 = vadd.f32 %v2333_v17, %v2328_v7  ;;  %v3912_v7 = vperm.slane %v3713_v59, 7 }
 0x868   : > { %v2339_v18 = vsel %vm506_vm3, %v2334_v15, 0.0 }
 0x869   : > { %2340 = vadd.xlane.f32.xlu2 %v2339_v18 }
 0x86b   : > { %v2316_v45 = vpop.f32.mrf.mxu0 }
 0x86c   : > { %v2329_v50 = vadd.f32 %v2316_v45, %v3720_v34 }
 0x86e   : > { %v2335_v29 = vadd.f32 %v2333_v17, %v2329_v50 }
 0x870   : > { %v2342_v3 = vsel %vm506_vm3, %v2335_v29, 0.0 }
 0x871   : > { %2343 = vadd.xlane.f32.xlu1 %v2342_v3 }
 0x8a6   : > { %v2319_v54 = vpop.f32.mrf.mxu0 }
 0x8a7   : > { %v2330_v9 = vadd.f32 %v2319_v54, %v3724_v22 }
 0x8a9   : > { %v2336_v1 = vadd.f32 %v2333_v17, %v2330_v9 }
 0x8ab   : > { %v2345_v49 = vsel %vm506_vm3, %v2336_v1, 0.0 }
 0x8ac   : > { %2346 = vadd.xlane.f32.xlu0 %v2345_v49 }
 0x8ae   : > { %v2321_v53 = vpop.f32.mrf.mxu0 }
 0x8af   : > { %v2331_v27 = vadd.f32 %v2321_v53, %v3728_v13 }
 0x8b1   : > { %v2337_v6 = vadd.f32 %v2333_v17, %v2331_v27 }
 0x8b3   : > { %v2348_v12 = vsel %vm506_vm3, %v2337_v6, 0.0 }
 0x8b4   : > { %2349 = vadd.xlane.f32.xlu2 %v2348_v12 }
 0x8b6   : > { %v2324_v46 = vpop.f32.mrf.mxu0 }
 0x8b7   : > { %v2332_v34 = vadd.f32 %v2324_v46, %v3732_v2 }
 0x8b9   : > { %v2338_v23 = vadd.f32 %v2333_v17, %v2332_v34 }
 0x8bb   : > { %v2351_v55 = vsel %vm519_vm2, %v2338_v23, 0.0 }
 0x8bc   : > { %2352 = vadd.xlane.f32.xlu1 %v2351_v55 }
 0x8be   : > { %v2326_v30 = vpop.f32.mrf.mxu0 }
 0x8dc   : > { %v2341_v22 = vpop.xlane.xlu2 %2340 }
 0x8dd   : > { %v2354_v57 = vmul.f32 %v2341_v22, %v3190_v21 }
 0x8df   : > { %v2359_v5 = vsub.f32 %v2334_v15, %v2354_v57 }
 0x8e1   : > { %v2364_v43 = vmul.f32 %v2359_v5, %v2359_v5 }
 0x8e3   : > { %v2369_v37 = vsel %vm506_vm3, %v2364_v43, 0.0 }
 0x8e4   : > { %v2344_v13 = vpop.xlane.xlu1 %2343  ;;  %2370 = vadd.xlane.f32.xlu0 %v2369_v37 }
 0x8e5   : > { %v2355_v58 = vmul.f32 %v2344_v13, %v3190_v21 }
 0x8e7   : > { %v2360_v16 = vsub.f32 %v2335_v29, %v2355_v58 }
 0x8e9   : > { %v2365_v60 = vmul.f32 %v2360_v16, %v2360_v16 }
 0x8eb   : > { %v2372_v2 = vsel %vm506_vm3, %v2365_v60, 0.0 }
 0x8ec   : > { %2373 = vadd.xlane.f32.xlu2 %v2372_v2 }
 0x91f   : > { %v2347_v61 = vpop.xlane.xlu0 %2346 }
 0x920   : > { %v2356_v11 = vmul.f32 %v2347_v61, %v3190_v21 }
 0x922   : > { %v3889_v39 = vsub.f32 %v2336_v1, %v2356_v11 }
 0x924   : > { %v2366_v56 = vmul.f32 %v3889_v39, %v3889_v39 }
 0x926   : > { %v2375_v33 = vsel %vm506_vm3, %v2366_v56, 0.0 }
 0x927   : > { %v2350_v40 = vpop.xlane.xlu2 %2349  ;;  %2376 = vadd.xlane.f32.xlu1 %v2375_v33 }
 0x928   : > { %v2357_v41 = vmul.f32 %v2350_v40, %v3190_v21 }
 0x92a   : > { %v3895_v19 = vsub.f32 %v2337_v6, %v2357_v41 }
 0x92c   : > { %v2367_v48 = vmul.f32 %v3895_v19, %v3895_v19 }
 0x92e   : > { %v2378_v0 = vsel %vm506_vm3, %v2367_v48, 0.0 }
 0x92f   : > { %2379 = vadd.xlane.f32.xlu0 %v2378_v0  ;;  %v2353_v31 = vpop.xlane.xlu1 %2352 }
 0x930   : > { %v2358_v20 = vmul.f32 %v2353_v31, %v3190_v21 }
 0x932   : > { %v3901_v36 = vsub.f32 %v2338_v23, %v2358_v20 }
 0x934   : > { %v2368_v14 = vmul.f32 %v3901_v36, %v3901_v36 }
 0x936   : > { %v2381_v62 = vsel %vm519_vm2, %v2368_v14, 0.0 }
 0x937   : > { %2382 = vadd.xlane.f32.xlu2 %v2381_v62 }
 0x957   : > { %v2371_v42 = vpop.xlane.xlu0 %2370 }
 0x958   : > { %v2384_v4 = vmul.f32 %v2371_v42, %v3190_v21 }
 0x95a   : > { %v2389_v32 = vadd.f32 1e-05, %v2384_v4 }
 0x95c   : > { %2998 = vrsqrt.f32 %v2389_v32  ;;  %vm2400_vm9 = vweird.f32 %v2389_v32 }
 0x95f   : > { %v2374_v35 = vpop.xlane.xlu2 %2373 }
 0x960   : > { %v2385_v10 = vmul.f32 %v2374_v35, %v3190_v21 }
 0x962   : > { %v2999_v8 = vpop.eup %2998  ;;  %v2390_v38 = vadd.f32 1e-05, %v2385_v10 }
 0x963   : > { %v2395_v63 = vmul.f32 %v2999_v8, %v2389_v32  ;;  %vm2401_vm13 = vweird.f32 %v2999_v8 }
 0x964   : > { %3000 = vrsqrt.f32 %v2390_v38  ;;  %vm2402_vm10 = vmor %vm2400_vm9, %vm2401_vm13  ;;  %vm2410_vm12 = vweird.f32 %v2390_v38 }
 0x965   : > { %v2396_v25 = vmul.f32 %v2999_v8, %v2395_v63 }
 0x967   : > { %v2397_v24 = vmul.f32 0.5, %v2396_v25 }
 0x969   : > { %v2398_v44 = vsub.f32 1.5, %v2397_v24 }
 0x96a   : > { %v3001_v26 = vpop.eup %3000 }
 0x96b   : > { %v2399_v51 = vmul.f32 %v2999_v8, %v2398_v44  ;;  %v2405_v52 = vmul.f32 %v3001_v26, %v2390_v38  ;;  %vm2411_vm11 = vweird.f32 %v3001_v26 }
 0x96c   : > { %vm2412_vm14 = vmor %vm2410_vm12, %vm2411_vm11 }
 0x96d   : > { %v2403_v17 = vsel %vm2402_vm10, %v2999_v8, %v2399_v51  ;;  %v2406_v28 = vmul.f32 %v3001_v26, %v2405_v52 }
 0x96e   : > { %v2444_v15 = vmul.f32 %v2403_v17, %v2359_v5 }
 0x96f   : > { %v2407_v18 = vmul.f32 0.5, %v2406_v28 }
 0x970   : > { %v2450_v45 = vmul.f32 %v3909_v47, %v2444_v15 }
 0x971   : > { %v2408_v50 = vsub.f32 1.5, %v2407_v18 }
 0x972   : > { %v3916_v29 = vadd.f32 %v3912_v7, %v2450_v45 }
 0x973   : > { %v2409_v3 = vmul.f32 %v3001_v26, %v2408_v50 }
 0x974   : > { %2461 = vst.msk [vmem:[#allocation2] sm:$0xff] %vm506_vm3, %v3916_v29 }
 0x975   : > { %v2413_v54 = vsel %vm2412_vm14, %v3001_v26, %v2409_v3 }
 0x976   : > { %v2445_v9 = vmul.f32 %v2413_v54, %v2360_v16 }
 0x978   : > { %v2451_v59 = vmul.f32 %v3909_v47, %v2445_v9 }
 0x97a   : > { %v2457_v1 = vadd.f32 %v3912_v7, %v2451_v59 }
 0x97c   : > { %2462 = vst.msk [vmem:[#allocation2 + $0x8] sm:$0xff] %vm506_vm3, %v2457_v1 }
 0x99a   : > { %v2377_v49 = vpop.xlane.xlu1 %2376 }
 0x99b   : > { %v2386_v53 = vmul.f32 %v2377_v49, %v3190_v21 }
 0x99d   : > { %v2391_v27 = vadd.f32 1e-05, %v2386_v53 }
 0x99f   : > { %3002 = vrsqrt.f32 %v2391_v27  ;;  %vm2420_vm0 = vweird.f32 %v2391_v27 }
 0x9a2   : > { %v2380_v6 = vpop.xlane.xlu0 %2379 }
 0x9a3   : > { %v2387_v12 = vmul.f32 %v2380_v6, %v3190_v21 }
 0x9a5   : > { %v3003_v46 = vpop.eup %3002  ;;  %v2392_v34 = vadd.f32 1e-05, %v2387_v12 }
 0x9a6   : > { %v2415_v23 = vmul.f32 %v3003_v46, %v2391_v27  ;;  %vm2421_vm15 = vweird.f32 %v3003_v46 }
 0x9a7   : > { %3004 = vrsqrt.f32 %v2392_v34  ;;  %vm2422_vm1 = vmor %vm2420_vm0, %vm2421_vm15  ;;  %vm2430_vm5 = vweird.f32 %v2392_v34 }
 0x9a8   : > { %v2416_v55 = vmul.f32 %v3003_v46, %v2415_v23 }
 0x9aa   : > { %v2417_v30 = vmul.f32 0.5, %v2416_v55  ;;  %v2383_v22 = vpop.xlane.xlu2 %2382 }
 0x9ab   : > { %v2388_v57 = vmul.f32 %v2383_v22, %v3190_v21 }
 0x9ac   : > { %v2418_v5 = vsub.f32 1.5, %v2417_v30 }
 0x9ad   : > { %v3005_v43 = vpop.eup %3004  ;;  %v2393_v37 = vadd.f32 1e-05, %v2388_v57 }
 0x9ae   : > { %v2419_v13 = vmul.f32 %v3003_v46, %v2418_v5  ;;  %v2425_v58 = vmul.f32 %v3005_v43, %v2392_v34  ;;  %vm2431_vm4 = vweird.f32 %v3005_v43 }
 0x9af   : > { %3006 = vrsqrt.f32 %v2393_v37  ;;  %vm2432_vm6 = vmor %vm2430_vm5, %vm2431_vm4  ;;  %vm2440_vm8 = vweird.f32 %v2393_v37 }
 0x9b0   : > { %v2423_v16 = vsel %vm2422_vm1, %v3003_v46, %v2419_v13  ;;  %v2426_v60 = vmul.f32 %v3005_v43, %v2425_v58 }
 0x9b1   : > { %v2446_v2 = vmul.f32 %v2423_v16, %v3889_v39 }
 0x9b2   : > { %v2427_v61 = vmul.f32 0.5, %v2426_v60 }
 0x9b3   : > { %v2452_v11 = vmul.f32 %v3909_v47, %v2446_v2 }
 0x9b4   : > { %v2428_v56 = vsub.f32 1.5, %v2427_v61 }
 0x9b5   : > { %v3007_v33 = vpop.eup %3006  ;;  %v2458_v21 = vadd.f32 %v3912_v7, %v2452_v11 }
 0x9b6   : > { %v2429_v40 = vmul.f32 %v3005_v43, %v2428_v56  ;;  %v2435_v41 = vmul.f32 %v3007_v33, %v2393_v37  ;;  %vm2441_vm7 = vweird.f32 %v3007_v33 }
 0x9b7   : > { %2463 = vst.msk [vmem:[#allocation2 + $0x10] sm:$0xff] %vm506_vm3, %v2458_v21  ;;  %vm2442_vm13 = vmor %vm2440_vm8, %vm2441_vm7 }
 0x9b8   : > { %v2433_v48 = vsel %vm2432_vm6, %v3005_v43, %v2429_v40  ;;  %v2436_v0 = vmul.f32 %v3007_v33, %v2435_v41 }
 0x9b9   : > { %v2447_v31 = vmul.f32 %v2433_v48, %v3895_v19 }
 0x9ba   : > { %v2437_v20 = vmul.f32 0.5, %v2436_v0 }
 0x9bb   : > { %v2453_v39 = vmul.f32 %v3909_v47, %v2447_v31 }
 0x9bc   : > { %v2438_v14 = vsub.f32 1.5, %v2437_v20 }
 0x9bd   : > { %v2459_v62 = vadd.f32 %v3912_v7, %v2453_v39 }
 0x9be   : > { %v2439_v42 = vmul.f32 %v3007_v33, %v2438_v14 }
 0x9bf   : > { %2464 = vst.msk [vmem:[#allocation2 + $0x18] sm:$0xff] %vm506_vm3, %v2459_v62 }
 0x9c0   : > { %v2443_v4 = vsel %vm2442_vm13, %v3007_v33, %v2439_v42 }
 0x9c1   : > { %v2448_v32 = vmul.f32 %v2443_v4, %v3901_v36 }
 0x9c3   : > { %v2454_v35 = vmul.f32 %v3909_v47, %v2448_v32  ;;  %2469 = sbr.rel (%p2740_p5) target bundleno = 2507 (0x9cb), region = 64 }
 0x9c5   : > { %v2460_v10 = vadd.f32 %v3912_v7, %v2454_v35 }
 0x9c7   : > { %2465 = vst.msk [vmem:[#allocation2 + $0x20] sm:$0x3] %vm519_vm2, %v2460_v10 }
 0x9c8   : > { %vm2470_vm9 = vcmask 253952   ;;  %vm2472_vm10 = vcmask 254977  }
 0x9c9   : > { %2471 = vst.msk [vmem:[#allocation3] sm:$0x1] %vm2470_vm9, %v3916_v29 }
 0x9ca   : > { %2473 = vst.msk [vmem:[#allocation3] sm:$0x2] %vm2472_vm10, %v2458_v21 }
 0x9cb PF: > { %p2773_p6 = scmp.eq.s32.totalorder %s3119_s10, 1  ;;  %s3062_s11 = smov [#allocation3]  }
 0x9cc   : > { %s2480_s15 = sshll.u32 %s3062_s11, 4  ;;  %s2482_s12 = sshll.u32 %s3956_s9, 4  ;;  %s2481_s15 = int_to_ptr.vmem [resolvable:$true] %s2480_s15  ;;  %s2483_s12 = int_to_ptr.hbm [resolvable:$true] %s2482_s12 }
 0x9cd   : > { %2770 = dma.vmem_to_hbm [thread:$0]  (%p2773_p6), %s2481_s15, 32, %s2483_s12, [#allocation4]  }
 0x9ce   : > { %3047 = dma.done.wait (%p2773_p6), [#allocation4], 32  }
 0x9cf   : > { %3049 = vsyncadd (%p2773_p6), [#allocation4], 4294967264 }
 0x9d0 PF: > { %s20_s30 = sadd.s32 1, %s3052_s30  }
 0x9d1   : > { %p17_p7 = scmp.ge.s32.totalorder %s20_s30, 4  }
 0x9d3   :  { %19 = sbr.rel (!%p17_p7) target bundleno = 1 (0x1), region = 112 }
 0x9d8   :  { %2496 = vsyncpa [#allocation4], 1 }
 0x9d9   :  { %2498 = vsyncpa [#allocation4 + $0x1], 1 }

</bundles_post_ra>
